<compile_context>
chip_gen: v6e
topology: v6e:2x2x1
jax: 0.10.0
libtpu: 0.0.40
codegen_flags: <defaults>
</compile_context>

<pallas_src>
import functools

import jax
import jax.numpy as jnp
from jax.experimental import pallas as pl
from jax.experimental.pallas import tpu as pltpu


_VMEM_LIMIT = 48 * 1024 * 1024          # fits v5e/v6e (128 MiB) and v7x (64 MiB)
_RECURRENCE_VMEM_BUDGET = 40 * 1024 * 1024


def _pick_tile(dim, pref):
    """Largest multiple-of-128 tile <= pref dividing dim, else the full dim."""
    cand = (pref // 128) * 128
    while cand >= 128:
        if dim % cand == 0:
            return cand
        cand -= 128
    return dim  # small / ragged dims: take the full extent (escape hatch)


def _pick_time_block(seq_len, batch, in_dim, hidden,
                     budget=_RECURRENCE_VMEM_BUDGET):
    """Largest t_blk dividing seq_len whose VMEM plan fits `budget`."""
    gate = 4 * hidden
    fixed = (in_dim * gate * 2          # W_ih resident, bf16, single buffer
             + hidden * gate * 2        # W_hh resident, bf16, single buffer
             + 2 * batch * hidden * 4   # h / c carries, f32
             + 2 * gate * 4)            # bias (double buffered)
    per_t = 2 * batch * (in_dim + hidden) * 4   # x block + y block, x2 buffers
    for t in (32, 16, 8, 4, 2, 1):
        if seq_len % t == 0 and fixed + t * per_t <= budget:
            return t
    return 1


# ----------------------------------------------------------------------------
# Tiled matmul + bias kernel (decoder). bf16 operands (weight already bf16 in
# HBM), f32 accumulation in VMEM scratch, bias added at the last K step.
# ----------------------------------------------------------------------------
def _matmul_bias_kernel(x_ref, w_ref, b_ref, o_ref, acc_ref):
    k = pl.program_id(2)

    @pl.when(k == 0)
    def _():
        acc_ref[...] = jnp.zeros_like(acc_ref)

    acc_ref[...] += jnp.dot(
        x_ref[...].astype(jnp.bfloat16),
        w_ref[...],                              # already bf16 in HBM
        preferred_element_type=jnp.float32,
    )

    @pl.when(k == pl.num_programs(2) - 1)
    def _():
        o_ref[...] = acc_ref[...] + b_ref[...]


def matmul_bias_pallas(x, w, b, *, tm_pref=1024, tn_pref=512, tk_pref=2048):
    """x: (M, K) f32, w: (K, N) bf16, b: (N,) f32 -> (M, N) f32."""
    M, K = x.shape
    K2, N = w.shape
    assert K == K2
    tm = _pick_tile(M, tm_pref)
    tn = _pick_tile(N, tn_pref)
    tk = _pick_tile(K, tk_pref)

    return pl.pallas_call(
        _matmul_bias_kernel,
        out_shape=jax.ShapeDtypeStruct((M, N), jnp.float32),
        grid_spec=pltpu.PrefetchScalarGridSpec(
            num_scalar_prefetch=0,
            grid=(M // tm, N // tn, K // tk),
            in_specs=[
                pl.BlockSpec((tm, tk), lambda i, j, k: (i, k)),
                pl.BlockSpec((tk, tn), lambda i, j, k: (k, j)),
                pl.BlockSpec((1, tn), lambda i, j, k: (0, j)),
            ],
            out_specs=pl.BlockSpec((tm, tn), lambda i, j, k: (i, j)),
            scratch_shapes=[pltpu.VMEM((tm, tn), jnp.float32)],
        ),
        compiler_params=pltpu.CompilerParams(
            dimension_semantics=("parallel", "parallel", "arbitrary"),
            vmem_limit_bytes=_VMEM_LIMIT,
        ),
    )(x, w, b.reshape(1, N))


# ----------------------------------------------------------------------------
# Fused LSTM layer kernel: grid over blocks of t_blk timesteps (sequential).
# Weights live in HBM (memory_space=ANY) and are DMA'd once into
# single-buffered VMEM scratch at grid step 0; both the x-projection and the
# h-projection run inside the recurrence loop (no gx round trip via HBM).
# h/c persist across grid steps in VMEM scratch.
# ----------------------------------------------------------------------------
def _lstm_fused_kernel(x_ref, wih_hbm, whh_hbm, b_ref, y_ref,
                       wih_v, whh_v, h_ref, c_ref, sem, *, t_blk, hidden):
    @pl.when(pl.program_id(0) == 0)
    def _():
        h_ref[...] = jnp.zeros_like(h_ref)
        c_ref[...] = jnp.zeros_like(c_ref)
        cp_ih = pltpu.make_async_copy(wih_hbm, wih_v, sem.at[0])
        cp_hh = pltpu.make_async_copy(whh_hbm, whh_v, sem.at[1])
        cp_ih.start()
        cp_hh.start()
        cp_ih.wait()
        cp_hh.wait()

    H = hidden
    bias = b_ref[...]                            # (1, 4H) f32

    def step(i, carry):
        h, c = carry
        # gates: (B, 4H); PyTorch gate order i, f, g, o.
        gates = (
            jnp.dot(x_ref[i].astype(jnp.bfloat16), wih_v[...],
                    preferred_element_type=jnp.float32)
            + jnp.dot(h.astype(jnp.bfloat16), whh_v[...],
                      preferred_element_type=jnp.float32)
            + bias)
        i_g = jax.nn.sigmoid(gates[:, 0:H])
        f_g = jax.nn.sigmoid(gates[:, H:2 * H])
        g_g = jnp.tanh(gates[:, 2 * H:3 * H])
        o_g = jax.nn.sigmoid(gates[:, 3 * H:4 * H])
        c_new = f_g * c + i_g * g_g
        h_new = o_g * jnp.tanh(c_new)
        y_ref[i] = h_new
        return (h_new, c_new)

    # Partial unroll: keeps LLO visibility without blowing vreg pressure when
    # a single step's (B, 4H) gate tensor already exceeds the register file.
    h_fin, c_fin = jax.lax.fori_loop(
        0, t_blk, step, (h_ref[...], c_ref[...]), unroll=min(t_blk, 8))
    h_ref[...] = h_fin
    c_ref[...] = c_fin


def lstm_layer_pallas(x_tm, w_ih_t, w_hh_t, b_fused):
    """x_tm: (S, B, In) f32 time-major input.
    w_ih_t: (In, 4H) bf16, w_hh_t: (H, 4H) bf16, b_fused: (4H,) f32.
    Returns hidden outputs (S, B, H) f32, time-major."""
    S, B, in_dim = x_tm.shape
    G = w_hh_t.shape[1]
    H = G // 4
    t_blk = _pick_time_block(S, B, in_dim, H)
    kernel = functools.partial(_lstm_fused_kernel, t_blk=t_blk, hidden=H)

    return pl.pallas_call(
        kernel,
        out_shape=jax.ShapeDtypeStruct((S, B, H), jnp.float32),
        grid_spec=pltpu.PrefetchScalarGridSpec(
            num_scalar_prefetch=0,
            grid=(S // t_blk,),
            in_specs=[
                pl.BlockSpec((t_blk, B, in_dim), lambda t: (t, 0, 0)),  # x
                pl.BlockSpec(memory_space=pl.ANY),                      # W_ih
                pl.BlockSpec(memory_space=pl.ANY),                      # W_hh
                pl.BlockSpec((1, G), lambda t: (0, 0)),                 # bias
            ],
            out_specs=pl.BlockSpec((t_blk, B, H), lambda t: (t, 0, 0)),
            scratch_shapes=[
                pltpu.VMEM((in_dim, G), jnp.bfloat16),  # W_ih resident (1 buf)
                pltpu.VMEM((H, G), jnp.bfloat16),       # W_hh resident (1 buf)
                pltpu.VMEM((B, H), jnp.float32),        # h carry
                pltpu.VMEM((B, H), jnp.float32),        # c carry
                pltpu.SemaphoreType.DMA((2,)),
            ],
        ),
        compiler_params=pltpu.CompilerParams(
            dimension_semantics=("arbitrary",),        # sequential recurrence
            vmem_limit_bytes=_VMEM_LIMIT,
        ),
    )(x_tm, w_ih_t, w_hh_t, b_fused.reshape(1, G))


# ----------------------------------------------------------------------------
# Full RNNLM forward.
# ----------------------------------------------------------------------------
def rnnlm_forward(x_idx, params):
    """x_idx: (bsz, seq_len) int32. Returns logits (bsz*seq_len, vocab)."""
    bsz, seq_len = x_idx.shape
    # Embedding lookup (gather) in JAX glue; dropout is identity (eval).
    x_emb = jnp.take(params["enc_w"], x_idx, axis=0)         # (B, S, E)
    cur = jnp.transpose(x_emb, (1, 0, 2))                     # (S, B, E)

    for l in range(params["num_layers"]):
        cur = lstm_layer_pallas(cur, params["w_ih_t"][l],
                                params["w_hh_t"][l], params["b_fused"][l])

    S, B, H = cur.shape
    # Small H-sized reorder to batch-major; decoder writes logits in the
    # PyTorch (bsz*seq_len, vocab) order (lane-dense stores over padded V).
    h_bm = jnp.transpose(cur, (1, 0, 2)).reshape(B * S, H)
    logit_pad = matmul_bias_pallas(h_bm, params["dec_w_t"], params["dec_b"])
    return logit_pad[:, :params["vocab_size"]]                # (B*S, V)


# ----------------------------------------------------------------------------
# Pure-JAX f32 reference (numerical sanity check; uses the same bf16-rounded
# weights upcast to f32 so the only deltas are activation rounding + accum).
# ----------------------------------------------------------------------------
def _lstm_ref(x_bm, w_ih_t, w_hh_t, b_fused):
    B, S, _ = x_bm.shape
    H = w_hh_t.shape[0]

    def step(carry, x_t):
        h, c = carry
        gates = x_t @ w_ih_t + h @ w_hh_t + b_fused
        i, f, g, o = jnp.split(gates, 4, axis=-1)
        i, f, o = jax.nn.sigmoid(i), jax.nn.sigmoid(f), jax.nn.sigmoid(o)
        g = jnp.tanh(g)
        c = f * c + i * g
        h = o * jnp.tanh(c)
        return (h, c), h

    x_tm = jnp.transpose(x_bm, (1, 0, 2))
    (_, _), ys = jax.lax.scan(step, (jnp.zeros((B, H)), jnp.zeros((B, H))), x_tm)
    return jnp.transpose(ys, (1, 0, 2))


def rnnlm_forward_ref(x_idx, params):
    bsz, seq_len = x_idx.shape
    out = jnp.take(params["enc_w"], x_idx, axis=0)
    for l in range(params["num_layers"]):
        out = _lstm_ref(out,
                        params["w_ih_t"][l].astype(jnp.float32),
                        params["w_hh_t"][l].astype(jnp.float32),
                        params["b_fused"][l])
    logit = out @ params["dec_w_t"].astype(jnp.float32) + params["dec_b"]
    logit = logit.reshape(bsz * seq_len, -1)
    return logit[:, :params["vocab_size"]]


# ----------------------------------------------------------------------------
# Deterministic parameter initialization (matches module __init__ shapes).
# Transposed bf16 weights / fused f32 biases / padded vocab built ONCE here.
# ----------------------------------------------------------------------------
def make_params(key, vocab_size, embedding_size, hidden_size, num_layers):
    keys = jax.random.split(key, 2 + 4 * num_layers)
    initrange = 0.1
    enc_w = jax.random.uniform(keys[0], (vocab_size, embedding_size),
                               jnp.float32, -initrange, initrange)
    dec_w = jax.random.uniform(keys[1], (vocab_size, hidden_size),
                               jnp.float32, -initrange, initrange)

    # Pad vocab to a multiple of 512 for lane-dense, well-tiled decoder output.
    v_pad = ((vocab_size + 511) // 512) * 512
    dec_w_t = jnp.transpose(dec_w)                       # (H, V)
    dec_w_t = jnp.pad(dec_w_t, ((0, 0), (0, v_pad - vocab_size)))
    dec_w_t = dec_w_t.astype(jnp.bfloat16)               # (H, V_pad) bf16
    dec_b = jnp.zeros((v_pad,), jnp.float32)

    k = 1.0 / jnp.sqrt(jnp.float32(hidden_size))
    w_ih_t, w_hh_t, b_fused = [], [], []
    for l in range(num_layers):
        in_dim = embedding_size if l == 0 else hidden_size
        kw = keys[2 + 4 * l: 2 + 4 * (l + 1)]
        w_ih = jax.random.uniform(kw[0], (4 * hidden_size, in_dim),
                                  jnp.float32, -k, k)
        w_hh = jax.random.uniform(kw[1], (4 * hidden_size, hidden_size),
                                  jnp.float32, -k, k)
        b_ih = jax.random.uniform(kw[2], (4 * hidden_size,), jnp.float32, -k, k)
        b_hh = jax.random.uniform(kw[3], (4 * hidden_size,), jnp.float32, -k, k)
        w_ih_t.append(jnp.transpose(w_ih).astype(jnp.bfloat16))  # (in_dim, 4H)
        w_hh_t.append(jnp.transpose(w_hh).astype(jnp.bfloat16))  # (H, 4H)
        b_fused.append(b_ih + b_hh)                              # (4H,) f32
    return {
        "enc_w": enc_w,
        "dec_w_t": dec_w_t,
        "dec_b": dec_b,
        "w_ih_t": w_ih_t, "w_hh_t": w_hh_t, "b_fused": b_fused,
        "num_layers": num_layers,
        "vocab_size": vocab_size,
    }


if __name__ == "__main__":
    vocab_size, embedding_size, hidden_size = 64, 32, 32
    bsz, seq_len, num_layers = 2, 8, 3

    key = jax.random.PRNGKey(0)
    pkey, xkey = jax.random.split(key)
    params = make_params(pkey, vocab_size, embedding_size, hidden_size,
                         num_layers)
    x = jax.random.randint(xkey, (bsz, seq_len), 0, vocab_size, dtype=jnp.int32)

    logit = rnnlm_forward(x, params)
    logit = jax.block_until_ready(logit)

    assert logit.shape == (bsz * seq_len, vocab_size), logit.shape

    ref = jax.block_until_ready(rnnlm_forward_ref(x, params))
    max_err = float(jnp.max(jnp.abs(logit - ref)))
    # bf16 matmul operands (f32 accumulation) -> loose-but-tight-enough check.
    assert jnp.allclose(logit, ref, atol=3e-2, rtol=3e-2), max_err

    print("KERNEL_OK")
</pallas_src>

<mosaic_0001>
module attributes {stable_mosaic.version = 11 : i64} {
  func.func @_lstm_fused_kernel(%arg0: i32, %arg1: memref<8x2x32xf32, #tpu.memory_space<vmem>>, %arg2: memref<32x128xbf16, #tpu.memory_space<any>>, %arg3: memref<32x128xbf16, #tpu.memory_space<any>>, %arg4: memref<1x128xf32, #tpu.memory_space<vmem>>, %arg5: memref<8x2x32xf32, #tpu.memory_space<vmem>>, %arg6: memref<32x128xbf16, #tpu.memory_space<vmem>>, %arg7: memref<32x128xbf16, #tpu.memory_space<vmem>>, %arg8: memref<2x32xf32, #tpu.memory_space<vmem>>, %arg9: memref<2x32xf32, #tpu.memory_space<vmem>>, %arg10: memref<2x!tpu.dma_semaphore, #tpu.memory_space<semaphore_mem>>) attributes {dimension_semantics = [#tpu.dimension_semantics<arbitrary>], iteration_bounds = array<i64: 1>, scalar_prefetch = 0 : i64, scratch_operands = 5 : i64, tpu.core_type = #tpu.core_type<tc>, window_params = [{transform_indices = @transform_0, window_bounds = array<i64: 8, 2, 32>}, {}, {}, {pipeline_mode = #tpu.pipeline_mode<synchronous>, transform_indices = @transform_3, window_bounds = array<i64: 1, 128>}, {transform_indices = @transform_4, window_bounds = array<i64: 8, 2, 32>}]} {
    %c0_i32 = arith.constant 0 : i32
    %0 = arith.cmpi eq, %arg0, %c0_i32 : i32
    %1 = arith.extui %0 : i1 to i32
    %c0_i32_0 = arith.constant 0 : i32
    %2 = arith.cmpi ne, %1, %c0_i32_0 : i32
    scf.if %2 {
      %cst_114 = arith.constant 0.000000e+00 : f32
      %336 = vector.broadcast %cst_114 : f32 to vector<2x32xf32>
      %c0_115 = arith.constant 0 : index
      %c0_116 = arith.constant 0 : index
      %337 = vector.load %arg8[%c0_115, %c0_116] : memref<2x32xf32, #tpu.memory_space<vmem>>, vector<2x32xf32>
      tpu.vector_store %arg8[%c0_115, %c0_116], %336 {strides = array<i32>} : memref<2x32xf32, #tpu.memory_space<vmem>>, vector<2x32xf32>,
      %cst_117 = arith.constant 0.000000e+00 : f32
      %338 = vector.broadcast %cst_117 : f32 to vector<2x32xf32>
      %c0_118 = arith.constant 0 : index
      %c0_119 = arith.constant 0 : index
      %339 = vector.load %arg9[%c0_118, %c0_119] : memref<2x32xf32, #tpu.memory_space<vmem>>, vector<2x32xf32>
      tpu.vector_store %arg9[%c0_118, %c0_119], %338 {strides = array<i32>} : memref<2x32xf32, #tpu.memory_space<vmem>>, vector<2x32xf32>,
      %c0_i32_120 = arith.constant 0 : i32
      %340 = tpu.memref_slice %arg10[%c0_i32_120] : memref<2x!tpu.dma_semaphore, #tpu.memory_space<semaphore_mem>> -> memref<1x!tpu.dma_semaphore, #tpu.memory_space<semaphore_mem>>
      %341 = tpu.memref_squeeze %340 : memref<1x!tpu.dma_semaphore, #tpu.memory_space<semaphore_mem>> -> memref<!tpu.dma_semaphore, #tpu.memory_space<semaphore_mem>>
      tpu.enqueue_dma source(%arg2 : memref<32x128xbf16, #tpu.memory_space<any>>) target(%arg6 : memref<32x128xbf16, #tpu.memory_space<vmem>>) target_semaphore(%341 : memref<!tpu.dma_semaphore, #tpu.memory_space<semaphore_mem>>)
      %c1_i32_121 = arith.constant 1 : i32
      %342 = tpu.memref_slice %arg10[%c1_i32_121] : memref<2x!tpu.dma_semaphore, #tpu.memory_space<semaphore_mem>> -> memref<1x!tpu.dma_semaphore, #tpu.memory_space<semaphore_mem>>
      %343 = tpu.memref_squeeze %342 : memref<1x!tpu.dma_semaphore, #tpu.memory_space<semaphore_mem>> -> memref<!tpu.dma_semaphore, #tpu.memory_space<semaphore_mem>>
      tpu.enqueue_dma source(%arg3 : memref<32x128xbf16, #tpu.memory_space<any>>) target(%arg7 : memref<32x128xbf16, #tpu.memory_space<vmem>>) target_semaphore(%343 : memref<!tpu.dma_semaphore, #tpu.memory_space<semaphore_mem>>)
      %c0_i32_122 = arith.constant 0 : i32
      %344 = tpu.memref_slice %arg10[%c0_i32_122] : memref<2x!tpu.dma_semaphore, #tpu.memory_space<semaphore_mem>> -> memref<1x!tpu.dma_semaphore, #tpu.memory_space<semaphore_mem>>
      %345 = tpu.memref_squeeze %344 : memref<1x!tpu.dma_semaphore, #tpu.memory_space<semaphore_mem>> -> memref<!tpu.dma_semaphore, #tpu.memory_space<semaphore_mem>>
      tpu.wait_dma2 semaphore(%345 : memref<!tpu.dma_semaphore, #tpu.memory_space<semaphore_mem>>) src(%arg2 : memref<32x128xbf16, #tpu.memory_space<any>>) dst(%arg6 : memref<32x128xbf16, #tpu.memory_space<vmem>>)
      %c1_i32_123 = arith.constant 1 : i32
      %346 = tpu.memref_slice %arg10[%c1_i32_123] : memref<2x!tpu.dma_semaphore, #tpu.memory_space<semaphore_mem>> -> memref<1x!tpu.dma_semaphore, #tpu.memory_space<semaphore_mem>>
      %347 = tpu.memref_squeeze %346 : memref<1x!tpu.dma_semaphore, #tpu.memory_space<semaphore_mem>> -> memref<!tpu.dma_semaphore, #tpu.memory_space<semaphore_mem>>
      tpu.wait_dma2 semaphore(%347 : memref<!tpu.dma_semaphore, #tpu.memory_space<semaphore_mem>>) src(%arg3 : memref<32x128xbf16, #tpu.memory_space<any>>) dst(%arg7 : memref<32x128xbf16, #tpu.memory_space<vmem>>)
    } else {
    }
    %c0 = arith.constant 0 : index
    %c0_1 = arith.constant 0 : index
    %3 = vector.load %arg4[%c0, %c0_1] : memref<1x128xf32, #tpu.memory_space<vmem>>, vector<1x128xf32>
    %c0_2 = arith.constant 0 : index
    %c0_3 = arith.constant 0 : index
    %4 = vector.load %arg8[%c0_2, %c0_3] : memref<2x32xf32, #tpu.memory_space<vmem>>, vector<2x32xf32>
    %c0_4 = arith.constant 0 : index
    %c0_5 = arith.constant 0 : index
    %5 = vector.load %arg9[%c0_4, %c0_5] : memref<2x32xf32, #tpu.memory_space<vmem>>, vector<2x32xf32>
    %c0_i32_6 = arith.constant 0 : i32
    %6 = arith.index_cast %c0_i32_6 : i32 to index
    %c0_7 = arith.constant 0 : index
    %c0_8 = arith.constant 0 : index
    %7 = vector.load %arg1[%6, %c0_7, %c0_8] : memref<8x2x32xf32, #tpu.memory_space<vmem>>, vector<1x2x32xf32>
    %8 = vector.shape_cast %7 : vector<1x2x32xf32> to vector<2x32xf32>
    %9 = arith.truncf %8 : vector<2x32xf32> to vector<2x32xbf16>
    %c0_9 = arith.constant 0 : index
    %c0_10 = arith.constant 0 : index
    %10 = vector.load %arg6[%c0_9, %c0_10] : memref<32x128xbf16, #tpu.memory_space<vmem>>, vector<32x128xbf16>
    %cst = arith.constant dense<0.000000e+00> : vector<2x128xf32>
    %11 = tpu.matmul %9, %10, %cst {dimension_numbers = #tpu.dot_dimension_numbers<[1], [0], [0], [1], [0, 0, 1, 1], [], []>} : vector<2x32xbf16>, vector<32x128xbf16>, vector<2x128xf32> -> vector<2x128xf32>
    %12 = arith.truncf %4 : vector<2x32xf32> to vector<2x32xbf16>
    %c0_11 = arith.constant 0 : index
    %c0_12 = arith.constant 0 : index
    %13 = vector.load %arg7[%c0_11, %c0_12] : memref<32x128xbf16, #tpu.memory_space<vmem>>, vector<32x128xbf16>
    %cst_13 = arith.constant dense<0.000000e+00> : vector<2x128xf32>
    %14 = tpu.matmul %12, %13, %cst_13 {dimension_numbers = #tpu.dot_dimension_numbers<[1], [0], [0], [1], [0, 0, 1, 1], [], []>} : vector<2x32xbf16>, vector<32x128xbf16>, vector<2x128xf32> -> vector<2x128xf32>
    %15 = arith.addf %11, %14 : vector<2x128xf32>
    %16 = vector.broadcast %3 : vector<1x128xf32> to vector<2x128xf32>
    %17 = arith.addf %15, %16 : vector<2x128xf32>
    %18 = vector.extract_strided_slice %17 {offsets = [0, 0], sizes = [2, 32], strides = [1, 1]} : vector<2x128xf32> to vector<2x32xf32>
    %19 = arith.negf %18 : vector<2x32xf32>
    %20 = math.exp %19 : vector<2x32xf32>
    %cst_14 = arith.constant 1.000000e+00 : f32
    %21 = vector.broadcast %cst_14 : f32 to vector<2x32xf32>
    %22 = arith.addf %21, %20 : vector<2x32xf32>
    %23 = arith.divf %21, %22 : vector<2x32xf32>
    %24 = vector.extract_strided_slice %17 {offsets = [0, 32], sizes = [2, 32], strides = [1, 1]} : vector<2x128xf32> to vector<2x32xf32>
    %25 = arith.negf %24 : vector<2x32xf32>
    %26 = math.exp %25 : vector<2x32xf32>
    %cst_15 = arith.constant 1.000000e+00 : f32
    %27 = vector.broadcast %cst_15 : f32 to vector<2x32xf32>
    %28 = arith.addf %27, %26 : vector<2x32xf32>
    %29 = arith.divf %27, %28 : vector<2x32xf32>
    %30 = vector.extract_strided_slice %17 {offsets = [0, 64], sizes = [2, 32], strides = [1, 1]} : vector<2x128xf32> to vector<2x32xf32>
    %31 = math.tanh %30 : vector<2x32xf32>
    %32 = vector.extract_strided_slice %17 {offsets = [0, 96], sizes = [2, 32], strides = [1, 1]} : vector<2x128xf32> to vector<2x32xf32>
    %33 = arith.negf %32 : vector<2x32xf32>
    %34 = math.exp %33 : vector<2x32xf32>
    %cst_16 = arith.constant 1.000000e+00 : f32
    %35 = vector.broadcast %cst_16 : f32 to vector<2x32xf32>
    %36 = arith.addf %35, %34 : vector<2x32xf32>
    %37 = arith.divf %35, %36 : vector<2x32xf32>
    %38 = arith.mulf %29, %5 : vector<2x32xf32>
    %39 = arith.mulf %23, %31 : vector<2x32xf32>
    %40 = arith.addf %38, %39 : vector<2x32xf32>
    %41 = math.tanh %40 : vector<2x32xf32>
    %42 = arith.mulf %37, %41 : vector<2x32xf32>
    %43 = arith.index_cast %c0_i32_6 : i32 to index
    %c0_17 = arith.constant 0 : index
    %c0_18 = arith.constant 0 : index
    %44 = vector.load %arg5[%43, %c0_17, %c0_18] : memref<8x2x32xf32, #tpu.memory_space<vmem>>, vector<1x2x32xf32>
    %45 = vector.shape_cast %44 : vector<1x2x32xf32> to vector<2x32xf32>
    %46 = vector.shape_cast %42 : vector<2x32xf32> to vector<1x2x32xf32>
    tpu.vector_store %arg5[%43, %c0_17, %c0_18], %46 {strides = array<i32>} : memref<8x2x32xf32, #tpu.memory_space<vmem>>, vector<1x2x32xf32>,
    %c1_i32 = arith.constant 1 : i32
    %47 = arith.index_cast %c1_i32 : i32 to index
    %c0_19 = arith.constant 0 : index
    %c0_20 = arith.constant 0 : index
    %48 = vector.load %arg1[%47, %c0_19, %c0_20] : memref<8x2x32xf32, #tpu.memory_space<vmem>>, vector<1x2x32xf32>
    %49 = vector.shape_cast %48 : vector<1x2x32xf32> to vector<2x32xf32>
    %50 = arith.truncf %49 : vector<2x32xf32> to vector<2x32xbf16>
    %c0_21 = arith.constant 0 : index
    %c0_22 = arith.constant 0 : index
    %51 = vector.load %arg6[%c0_21, %c0_22] : memref<32x128xbf16, #tpu.memory_space<vmem>>, vector<32x128xbf16>
    %cst_23 = arith.constant dense<0.000000e+00> : vector<2x128xf32>
    %52 = tpu.matmul %50, %51, %cst_23 {dimension_numbers = #tpu.dot_dimension_numbers<[1], [0], [0], [1], [0, 0, 1, 1], [], []>} : vector<2x32xbf16>, vector<32x128xbf16>, vector<2x128xf32> -> vector<2x128xf32>
    %53 = arith.truncf %42 : vector<2x32xf32> to vector<2x32xbf16>
    %c0_24 = arith.constant 0 : index
    %c0_25 = arith.constant 0 : index
    %54 = vector.load %arg7[%c0_24, %c0_25] : memref<32x128xbf16, #tpu.memory_space<vmem>>, vector<32x128xbf16>
    %cst_26 = arith.constant dense<0.000000e+00> : vector<2x128xf32>
    %55 = tpu.matmul %53, %54, %cst_26 {dimension_numbers = #tpu.dot_dimension_numbers<[1], [0], [0], [1], [0, 0, 1, 1], [], []>} : vector<2x32xbf16>, vector<32x128xbf16>, vector<2x128xf32> -> vector<2x128xf32>
    %56 = arith.addf %52, %55 : vector<2x128xf32>
    %57 = vector.broadcast %3 : vector<1x128xf32> to vector<2x128xf32>
    %58 = arith.addf %56, %57 : vector<2x128xf32>
    %59 = vector.extract_strided_slice %58 {offsets = [0, 0], sizes = [2, 32], strides = [1, 1]} : vector<2x128xf32> to vector<2x32xf32>
    %60 = arith.negf %59 : vector<2x32xf32>
    %61 = math.exp %60 : vector<2x32xf32>
    %cst_27 = arith.constant 1.000000e+00 : f32
    %62 = vector.broadcast %cst_27 : f32 to vector<2x32xf32>
    %63 = arith.addf %62, %61 : vector<2x32xf32>
    %64 = arith.divf %62, %63 : vector<2x32xf32>
    %65 = vector.extract_strided_slice %58 {offsets = [0, 32], sizes = [2, 32], strides = [1, 1]} : vector<2x128xf32> to vector<2x32xf32>
    %66 = arith.negf %65 : vector<2x32xf32>
    %67 = math.exp %66 : vector<2x32xf32>
    %cst_28 = arith.constant 1.000000e+00 : f32
    %68 = vector.broadcast %cst_28 : f32 to vector<2x32xf32>
    %69 = arith.addf %68, %67 : vector<2x32xf32>
    %70 = arith.divf %68, %69 : vector<2x32xf32>
    %71 = vector.extract_strided_slice %58 {offsets = [0, 64], sizes = [2, 32], strides = [1, 1]} : vector<2x128xf32> to vector<2x32xf32>
    %72 = math.tanh %71 : vector<2x32xf32>
    %73 = vector.extract_strided_slice %58 {offsets = [0, 96], sizes = [2, 32], strides = [1, 1]} : vector<2x128xf32> to vector<2x32xf32>
    %74 = arith.negf %73 : vector<2x32xf32>
    %75 = math.exp %74 : vector<2x32xf32>
    %cst_29 = arith.constant 1.000000e+00 : f32
    %76 = vector.broadcast %cst_29 : f32 to vector<2x32xf32>
    %77 = arith.addf %76, %75 : vector<2x32xf32>
    %78 = arith.divf %76, %77 : vector<2x32xf32>
    %79 = arith.mulf %70, %40 : vector<2x32xf32>
    %80 = arith.mulf %64, %72 : vector<2x32xf32>
    %81 = arith.addf %79, %80 : vector<2x32xf32>
    %82 = math.tanh %81 : vector<2x32xf32>
    %83 = arith.mulf %78, %82 : vector<2x32xf32>
    %84 = arith.index_cast %c1_i32 : i32 to index
    %c0_30 = arith.constant 0 : index
    %c0_31 = arith.constant 0 : index
    %85 = vector.load %arg5[%84, %c0_30, %c0_31] : memref<8x2x32xf32, #tpu.memory_space<vmem>>, vector<1x2x32xf32>
    %86 = vector.shape_cast %85 : vector<1x2x32xf32> to vector<2x32xf32>
    %87 = vector.shape_cast %83 : vector<2x32xf32> to vector<1x2x32xf32>
    tpu.vector_store %arg5[%84, %c0_30, %c0_31], %87 {strides = array<i32>} : memref<8x2x32xf32, #tpu.memory_space<vmem>>, vector<1x2x32xf32>,
    %c2_i32 = arith.constant 2 : i32
    %88 = arith.index_cast %c2_i32 : i32 to index
    %c0_32 = arith.constant 0 : index
    %c0_33 = arith.constant 0 : index
    %89 = vector.load %arg1[%88, %c0_32, %c0_33] : memref<8x2x32xf32, #tpu.memory_space<vmem>>, vector<1x2x32xf32>
    %90 = vector.shape_cast %89 : vector<1x2x32xf32> to vector<2x32xf32>
    %91 = arith.truncf %90 : vector<2x32xf32> to vector<2x32xbf16>
    %c0_34 = arith.constant 0 : index
    %c0_35 = arith.constant 0 : index
    %92 = vector.load %arg6[%c0_34, %c0_35] : memref<32x128xbf16, #tpu.memory_space<vmem>>, vector<32x128xbf16>
    %cst_36 = arith.constant dense<0.000000e+00> : vector<2x128xf32>
    %93 = tpu.matmul %91, %92, %cst_36 {dimension_numbers = #tpu.dot_dimension_numbers<[1], [0], [0], [1], [0, 0, 1, 1], [], []>} : vector<2x32xbf16>, vector<32x128xbf16>, vector<2x128xf32> -> vector<2x128xf32>
    %94 = arith.truncf %83 : vector<2x32xf32> to vector<2x32xbf16>
    %c0_37 = arith.constant 0 : index
    %c0_38 = arith.constant 0 : index
    %95 = vector.load %arg7[%c0_37, %c0_38] : memref<32x128xbf16, #tpu.memory_space<vmem>>, vector<32x128xbf16>
    %cst_39 = arith.constant dense<0.000000e+00> : vector<2x128xf32>
    %96 = tpu.matmul %94, %95, %cst_39 {dimension_numbers = #tpu.dot_dimension_numbers<[1], [0], [0], [1], [0, 0, 1, 1], [], []>} : vector<2x32xbf16>, vector<32x128xbf16>, vector<2x128xf32> -> vector<2x128xf32>
    %97 = arith.addf %93, %96 : vector<2x128xf32>
    %98 = vector.broadcast %3 : vector<1x128xf32> to vector<2x128xf32>
    %99 = arith.addf %97, %98 : vector<2x128xf32>
    %100 = vector.extract_strided_slice %99 {offsets = [0, 0], sizes = [2, 32], strides = [1, 1]} : vector<2x128xf32> to vector<2x32xf32>
    %101 = arith.negf %100 : vector<2x32xf32>
    %102 = math.exp %101 : vector<2x32xf32>
    %cst_40 = arith.constant 1.000000e+00 : f32
    %103 = vector.broadcast %cst_40 : f32 to vector<2x32xf32>
    %104 = arith.addf %103, %102 : vector<2x32xf32>
    %105 = arith.divf %103, %104 : vector<2x32xf32>
    %106 = vector.extract_strided_slice %99 {offsets = [0, 32], sizes = [2, 32], strides = [1, 1]} : vector<2x128xf32> to vector<2x32xf32>
    %107 = arith.negf %106 : vector<2x32xf32>
    %108 = math.exp %107 : vector<2x32xf32>
    %cst_41 = arith.constant 1.000000e+00 : f32
    %109 = vector.broadcast %cst_41 : f32 to vector<2x32xf32>
    %110 = arith.addf %109, %108 : vector<2x32xf32>
    %111 = arith.divf %109, %110 : vector<2x32xf32>
    %112 = vector.extract_strided_slice %99 {offsets = [0, 64], sizes = [2, 32], strides = [1, 1]} : vector<2x128xf32> to vector<2x32xf32>
    %113 = math.tanh %112 : vector<2x32xf32>
    %114 = vector.extract_strided_slice %99 {offsets = [0, 96], sizes = [2, 32], strides = [1, 1]} : vector<2x128xf32> to vector<2x32xf32>
    %115 = arith.negf %114 : vector<2x32xf32>
    %116 = math.exp %115 : vector<2x32xf32>
    %cst_42 = arith.constant 1.000000e+00 : f32
    %117 = vector.broadcast %cst_42 : f32 to vector<2x32xf32>
    %118 = arith.addf %117, %116 : vector<2x32xf32>
    %119 = arith.divf %117, %118 : vector<2x32xf32>
    %120 = arith.mulf %111, %81 : vector<2x32xf32>
    %121 = arith.mulf %105, %113 : vector<2x32xf32>
    %122 = arith.addf %120, %121 : vector<2x32xf32>
    %123 = math.tanh %122 : vector<2x32xf32>
    %124 = arith.mulf %119, %123 : vector<2x32xf32>
    %125 = arith.index_cast %c2_i32 : i32 to index
    %c0_43 = arith.constant 0 : index
    %c0_44 = arith.constant 0 : index
    %126 = vector.load %arg5[%125, %c0_43, %c0_44] : memref<8x2x32xf32, #tpu.memory_space<vmem>>, vector<1x2x32xf32>
    %127 = vector.shape_cast %126 : vector<1x2x32xf32> to vector<2x32xf32>
    %128 = vector.shape_cast %124 : vector<2x32xf32> to vector<1x2x32xf32>
    tpu.vector_store %arg5[%125, %c0_43, %c0_44], %128 {strides = array<i32>} : memref<8x2x32xf32, #tpu.memory_space<vmem>>, vector<1x2x32xf32>,
    %c3_i32 = arith.constant 3 : i32
    %129 = arith.index_cast %c3_i32 : i32 to index
    %c0_45 = arith.constant 0 : index
    %c0_46 = arith.constant 0 : index
    %130 = vector.load %arg1[%129, %c0_45, %c0_46] : memref<8x2x32xf32, #tpu.memory_space<vmem>>, vector<1x2x32xf32>
    %131 = vector.shape_cast %130 : vector<1x2x32xf32> to vector<2x32xf32>
    %132 = arith.truncf %131 : vector<2x32xf32> to vector<2x32xbf16>
    %c0_47 = arith.constant 0 : index
    %c0_48 = arith.constant 0 : index
    %133 = vector.load %arg6[%c0_47, %c0_48] : memref<32x128xbf16, #tpu.memory_space<vmem>>, vector<32x128xbf16>
    %cst_49 = arith.constant dense<0.000000e+00> : vector<2x128xf32>
    %134 = tpu.matmul %132, %133, %cst_49 {dimension_numbers = #tpu.dot_dimension_numbers<[1], [0], [0], [1], [0, 0, 1, 1], [], []>} : vector<2x32xbf16>, vector<32x128xbf16>, vector<2x128xf32> -> vector<2x128xf32>
    %135 = arith.truncf %124 : vector<2x32xf32> to vector<2x32xbf16>
    %c0_50 = arith.constant 0 : index
    %c0_51 = arith.constant 0 : index
    %136 = vector.load %arg7[%c0_50, %c0_51] : memref<32x128xbf16, #tpu.memory_space<vmem>>, vector<32x128xbf16>
    %cst_52 = arith.constant dense<0.000000e+00> : vector<2x128xf32>
    %137 = tpu.matmul %135, %136, %cst_52 {dimension_numbers = #tpu.dot_dimension_numbers<[1], [0], [0], [1], [0, 0, 1, 1], [], []>} : vector<2x32xbf16>, vector<32x128xbf16>, vector<2x128xf32> -> vector<2x128xf32>
    %138 = arith.addf %134, %137 : vector<2x128xf32>
    %139 = vector.broadcast %3 : vector<1x128xf32> to vector<2x128xf32>
    %140 = arith.addf %138, %139 : vector<2x128xf32>
    %141 = vector.extract_strided_slice %140 {offsets = [0, 0], sizes = [2, 32], strides = [1, 1]} : vector<2x128xf32> to vector<2x32xf32>
    %142 = arith.negf %141 : vector<2x32xf32>
    %143 = math.exp %142 : vector<2x32xf32>
    %cst_53 = arith.constant 1.000000e+00 : f32
    %144 = vector.broadcast %cst_53 : f32 to vector<2x32xf32>
    %145 = arith.addf %144, %143 : vector<2x32xf32>
    %146 = arith.divf %144, %145 : vector<2x32xf32>
    %147 = vector.extract_strided_slice %140 {offsets = [0, 32], sizes = [2, 32], strides = [1, 1]} : vector<2x128xf32> to vector<2x32xf32>
    %148 = arith.negf %147 : vector<2x32xf32>
    %149 = math.exp %148 : vector<2x32xf32>
    %cst_54 = arith.constant 1.000000e+00 : f32
    %150 = vector.broadcast %cst_54 : f32 to vector<2x32xf32>
    %151 = arith.addf %150, %149 : vector<2x32xf32>
    %152 = arith.divf %150, %151 : vector<2x32xf32>
    %153 = vector.extract_strided_slice %140 {offsets = [0, 64], sizes = [2, 32], strides = [1, 1]} : vector<2x128xf32> to vector<2x32xf32>
    %154 = math.tanh %153 : vector<2x32xf32>
    %155 = vector.extract_strided_slice %140 {offsets = [0, 96], sizes = [2, 32], strides = [1, 1]} : vector<2x128xf32> to vector<2x32xf32>
    %156 = arith.negf %155 : vector<2x32xf32>
    %157 = math.exp %156 : vector<2x32xf32>
    %cst_55 = arith.constant 1.000000e+00 : f32
    %158 = vector.broadcast %cst_55 : f32 to vector<2x32xf32>
    %159 = arith.addf %158, %157 : vector<2x32xf32>
    %160 = arith.divf %158, %159 : vector<2x32xf32>
    %161 = arith.mulf %152, %122 : vector<2x32xf32>
    %162 = arith.mulf %146, %154 : vector<2x32xf32>
    %163 = arith.addf %161, %162 : vector<2x32xf32>
    %164 = math.tanh %163 : vector<2x32xf32>
    %165 = arith.mulf %160, %164 : vector<2x32xf32>
    %166 = arith.index_cast %c3_i32 : i32 to index
    %c0_56 = arith.constant 0 : index
    %c0_57 = arith.constant 0 : index
    %167 = vector.load %arg5[%166, %c0_56, %c0_57] : memref<8x2x32xf32, #tpu.memory_space<vmem>>, vector<1x2x32xf32>
    %168 = vector.shape_cast %167 : vector<1x2x32xf32> to vector<2x32xf32>
    %169 = vector.shape_cast %165 : vector<2x32xf32> to vector<1x2x32xf32>
    tpu.vector_store %arg5[%166, %c0_56, %c0_57], %169 {strides = array<i32>} : memref<8x2x32xf32, #tpu.memory_space<vmem>>, vector<1x2x32xf32>,
    %c4_i32 = arith.constant 4 : i32
    %170 = arith.index_cast %c4_i32 : i32 to index
    %c0_58 = arith.constant 0 : index
    %c0_59 = arith.constant 0 : index
    %171 = vector.load %arg1[%170, %c0_58, %c0_59] : memref<8x2x32xf32, #tpu.memory_space<vmem>>, vector<1x2x32xf32>
    %172 = vector.shape_cast %171 : vector<1x2x32xf32> to vector<2x32xf32>
    %173 = arith.truncf %172 : vector<2x32xf32> to vector<2x32xbf16>
    %c0_60 = arith.constant 0 : index
    %c0_61 = arith.constant 0 : index
    %174 = vector.load %arg6[%c0_60, %c0_61] : memref<32x128xbf16, #tpu.memory_space<vmem>>, vector<32x128xbf16>
    %cst_62 = arith.constant dense<0.000000e+00> : vector<2x128xf32>
    %175 = tpu.matmul %173, %174, %cst_62 {dimension_numbers = #tpu.dot_dimension_numbers<[1], [0], [0], [1], [0, 0, 1, 1], [], []>} : vector<2x32xbf16>, vector<32x128xbf16>, vector<2x128xf32> -> vector<2x128xf32>
    %176 = arith.truncf %165 : vector<2x32xf32> to vector<2x32xbf16>
    %c0_63 = arith.constant 0 : index
    %c0_64 = arith.constant 0 : index
    %177 = vector.load %arg7[%c0_63, %c0_64] : memref<32x128xbf16, #tpu.memory_space<vmem>>, vector<32x128xbf16>
    %cst_65 = arith.constant dense<0.000000e+00> : vector<2x128xf32>
    %178 = tpu.matmul %176, %177, %cst_65 {dimension_numbers = #tpu.dot_dimension_numbers<[1], [0], [0], [1], [0, 0, 1, 1], [], []>} : vector<2x32xbf16>, vector<32x128xbf16>, vector<2x128xf32> -> vector<2x128xf32>
    %179 = arith.addf %175, %178 : vector<2x128xf32>
    %180 = vector.broadcast %3 : vector<1x128xf32> to vector<2x128xf32>
    %181 = arith.addf %179, %180 : vector<2x128xf32>
    %182 = vector.extract_strided_slice %181 {offsets = [0, 0], sizes = [2, 32], strides = [1, 1]} : vector<2x128xf32> to vector<2x32xf32>
    %183 = arith.negf %182 : vector<2x32xf32>
    %184 = math.exp %183 : vector<2x32xf32>
    %cst_66 = arith.constant 1.000000e+00 : f32
    %185 = vector.broadcast %cst_66 : f32 to vector<2x32xf32>
    %186 = arith.addf %185, %184 : vector<2x32xf32>
    %187 = arith.divf %185, %186 : vector<2x32xf32>
    %188 = vector.extract_strided_slice %181 {offsets = [0, 32], sizes = [2, 32], strides = [1, 1]} : vector<2x128xf32> to vector<2x32xf32>
    %189 = arith.negf %188 : vector<2x32xf32>
    %190 = math.exp %189 : vector<2x32xf32>
    %cst_67 = arith.constant 1.000000e+00 : f32
    %191 = vector.broadcast %cst_67 : f32 to vector<2x32xf32>
    %192 = arith.addf %191, %190 : vector<2x32xf32>
    %193 = arith.divf %191, %192 : vector<2x32xf32>
    %194 = vector.extract_strided_slice %181 {offsets = [0, 64], sizes = [2, 32], strides = [1, 1]} : vector<2x128xf32> to vector<2x32xf32>
    %195 = math.tanh %194 : vector<2x32xf32>
    %196 = vector.extract_strided_slice %181 {offsets = [0, 96], sizes = [2, 32], strides = [1, 1]} : vector<2x128xf32> to vector<2x32xf32>
    %197 = arith.negf %196 : vector<2x32xf32>
    %198 = math.exp %197 : vector<2x32xf32>
    %cst_68 = arith.constant 1.000000e+00 : f32
    %199 = vector.broadcast %cst_68 : f32 to vector<2x32xf32>
    %200 = arith.addf %199, %198 : vector<2x32xf32>
    %201 = arith.divf %199, %200 : vector<2x32xf32>
    %202 = arith.mulf %193, %163 : vector<2x32xf32>
    %203 = arith.mulf %187, %195 : vector<2x32xf32>
    %204 = arith.addf %202, %203 : vector<2x32xf32>
    %205 = math.tanh %204 : vector<2x32xf32>
    %206 = arith.mulf %201, %205 : vector<2x32xf32>
    %207 = arith.index_cast %c4_i32 : i32 to index
    %c0_69 = arith.constant 0 : index
    %c0_70 = arith.constant 0 : index
    %208 = vector.load %arg5[%207, %c0_69, %c0_70] : memref<8x2x32xf32, #tpu.memory_space<vmem>>, vector<1x2x32xf32>
    %209 = vector.shape_cast %208 : vector<1x2x32xf32> to vector<2x32xf32>
    %210 = vector.shape_cast %206 : vector<2x32xf32> to vector<1x2x32xf32>
    tpu.vector_store %arg5[%207, %c0_69, %c0_70], %210 {strides = array<i32>} : memref<8x2x32xf32, #tpu.memory_space<vmem>>, vector<1x2x32xf32>,
    %c5_i32 = arith.constant 5 : i32
    %211 = arith.index_cast %c5_i32 : i32 to index
    %c0_71 = arith.constant 0 : index
    %c0_72 = arith.constant 0 : index
    %212 = vector.load %arg1[%211, %c0_71, %c0_72] : memref<8x2x32xf32, #tpu.memory_space<vmem>>, vector<1x2x32xf32>
    %213 = vector.shape_cast %212 : vector<1x2x32xf32> to vector<2x32xf32>
    %214 = arith.truncf %213 : vector<2x32xf32> to vector<2x32xbf16>
    %c0_73 = arith.constant 0 : index
    %c0_74 = arith.constant 0 : index
    %215 = vector.load %arg6[%c0_73, %c0_74] : memref<32x128xbf16, #tpu.memory_space<vmem>>, vector<32x128xbf16>
    %cst_75 = arith.constant dense<0.000000e+00> : vector<2x128xf32>
    %216 = tpu.matmul %214, %215, %cst_75 {dimension_numbers = #tpu.dot_dimension_numbers<[1], [0], [0], [1], [0, 0, 1, 1], [], []>} : vector<2x32xbf16>, vector<32x128xbf16>, vector<2x128xf32> -> vector<2x128xf32>
    %217 = arith.truncf %206 : vector<2x32xf32> to vector<2x32xbf16>
    %c0_76 = arith.constant 0 : index
    %c0_77 = arith.constant 0 : index
    %218 = vector.load %arg7[%c0_76, %c0_77] : memref<32x128xbf16, #tpu.memory_space<vmem>>, vector<32x128xbf16>
    %cst_78 = arith.constant dense<0.000000e+00> : vector<2x128xf32>
    %219 = tpu.matmul %217, %218, %cst_78 {dimension_numbers = #tpu.dot_dimension_numbers<[1], [0], [0], [1], [0, 0, 1, 1], [], []>} : vector<2x32xbf16>, vector<32x128xbf16>, vector<2x128xf32> -> vector<2x128xf32>
    %220 = arith.addf %216, %219 : vector<2x128xf32>
    %221 = vector.broadcast %3 : vector<1x128xf32> to vector<2x128xf32>
    %222 = arith.addf %220, %221 : vector<2x128xf32>
    %223 = vector.extract_strided_slice %222 {offsets = [0, 0], sizes = [2, 32], strides = [1, 1]} : vector<2x128xf32> to vector<2x32xf32>
    %224 = arith.negf %223 : vector<2x32xf32>
    %225 = math.exp %224 : vector<2x32xf32>
    %cst_79 = arith.constant 1.000000e+00 : f32
    %226 = vector.broadcast %cst_79 : f32 to vector<2x32xf32>
    %227 = arith.addf %226, %225 : vector<2x32xf32>
    %228 = arith.divf %226, %227 : vector<2x32xf32>
    %229 = vector.extract_strided_slice %222 {offsets = [0, 32], sizes = [2, 32], strides = [1, 1]} : vector<2x128xf32> to vector<2x32xf32>
    %230 = arith.negf %229 : vector<2x32xf32>
    %231 = math.exp %230 : vector<2x32xf32>
    %cst_80 = arith.constant 1.000000e+00 : f32
    %232 = vector.broadcast %cst_80 : f32 to vector<2x32xf32>
    %233 = arith.addf %232, %231 : vector<2x32xf32>
    %234 = arith.divf %232, %233 : vector<2x32xf32>
    %235 = vector.extract_strided_slice %222 {offsets = [0, 64], sizes = [2, 32], strides = [1, 1]} : vector<2x128xf32> to vector<2x32xf32>
    %236 = math.tanh %235 : vector<2x32xf32>
    %237 = vector.extract_strided_slice %222 {offsets = [0, 96], sizes = [2, 32], strides = [1, 1]} : vector<2x128xf32> to vector<2x32xf32>
    %238 = arith.negf %237 : vector<2x32xf32>
    %239 = math.exp %238 : vector<2x32xf32>
    %cst_81 = arith.constant 1.000000e+00 : f32
    %240 = vector.broadcast %cst_81 : f32 to vector<2x32xf32>
    %241 = arith.addf %240, %239 : vector<2x32xf32>
    %242 = arith.divf %240, %241 : vector<2x32xf32>
    %243 = arith.mulf %234, %204 : vector<2x32xf32>
    %244 = arith.mulf %228, %236 : vector<2x32xf32>
    %245 = arith.addf %243, %244 : vector<2x32xf32>
    %246 = math.tanh %245 : vector<2x32xf32>
    %247 = arith.mulf %242, %246 : vector<2x32xf32>
    %248 = arith.index_cast %c5_i32 : i32 to index
    %c0_82 = arith.constant 0 : index
    %c0_83 = arith.constant 0 : index
    %249 = vector.load %arg5[%248, %c0_82, %c0_83] : memref<8x2x32xf32, #tpu.memory_space<vmem>>, vector<1x2x32xf32>
    %250 = vector.shape_cast %249 : vector<1x2x32xf32> to vector<2x32xf32>
    %251 = vector.shape_cast %247 : vector<2x32xf32> to vector<1x2x32xf32>
    tpu.vector_store %arg5[%248, %c0_82, %c0_83], %251 {strides = array<i32>} : memref<8x2x32xf32, #tpu.memory_space<vmem>>, vector<1x2x32xf32>,
    %c6_i32 = arith.constant 6 : i32
    %252 = arith.index_cast %c6_i32 : i32 to index
    %c0_84 = arith.constant 0 : index
    %c0_85 = arith.constant 0 : index
    %253 = vector.load %arg1[%252, %c0_84, %c0_85] : memref<8x2x32xf32, #tpu.memory_space<vmem>>, vector<1x2x32xf32>
    %254 = vector.shape_cast %253 : vector<1x2x32xf32> to vector<2x32xf32>
    %255 = arith.truncf %254 : vector<2x32xf32> to vector<2x32xbf16>
    %c0_86 = arith.constant 0 : index
    %c0_87 = arith.constant 0 : index
    %256 = vector.load %arg6[%c0_86, %c0_87] : memref<32x128xbf16, #tpu.memory_space<vmem>>, vector<32x128xbf16>
    %cst_88 = arith.constant dense<0.000000e+00> : vector<2x128xf32>
    %257 = tpu.matmul %255, %256, %cst_88 {dimension_numbers = #tpu.dot_dimension_numbers<[1], [0], [0], [1], [0, 0, 1, 1], [], []>} : vector<2x32xbf16>, vector<32x128xbf16>, vector<2x128xf32> -> vector<2x128xf32>
    %258 = arith.truncf %247 : vector<2x32xf32> to vector<2x32xbf16>
    %c0_89 = arith.constant 0 : index
    %c0_90 = arith.constant 0 : index
    %259 = vector.load %arg7[%c0_89, %c0_90] : memref<32x128xbf16, #tpu.memory_space<vmem>>, vector<32x128xbf16>
    %cst_91 = arith.constant dense<0.000000e+00> : vector<2x128xf32>
    %260 = tpu.matmul %258, %259, %cst_91 {dimension_numbers = #tpu.dot_dimension_numbers<[1], [0], [0], [1], [0, 0, 1, 1], [], []>} : vector<2x32xbf16>, vector<32x128xbf16>, vector<2x128xf32> -> vector<2x128xf32>
    %261 = arith.addf %257, %260 : vector<2x128xf32>
    %262 = vector.broadcast %3 : vector<1x128xf32> to vector<2x128xf32>
    %263 = arith.addf %261, %262 : vector<2x128xf32>
    %264 = vector.extract_strided_slice %263 {offsets = [0, 0], sizes = [2, 32], strides = [1, 1]} : vector<2x128xf32> to vector<2x32xf32>
    %265 = arith.negf %264 : vector<2x32xf32>
    %266 = math.exp %265 : vector<2x32xf32>
    %cst_92 = arith.constant 1.000000e+00 : f32
    %267 = vector.broadcast %cst_92 : f32 to vector<2x32xf32>
    %268 = arith.addf %267, %266 : vector<2x32xf32>
    %269 = arith.divf %267, %268 : vector<2x32xf32>
    %270 = vector.extract_strided_slice %263 {offsets = [0, 32], sizes = [2, 32], strides = [1, 1]} : vector<2x128xf32> to vector<2x32xf32>
    %271 = arith.negf %270 : vector<2x32xf32>
    %272 = math.exp %271 : vector<2x32xf32>
    %cst_93 = arith.constant 1.000000e+00 : f32
    %273 = vector.broadcast %cst_93 : f32 to vector<2x32xf32>
    %274 = arith.addf %273, %272 : vector<2x32xf32>
    %275 = arith.divf %273, %274 : vector<2x32xf32>
    %276 = vector.extract_strided_slice %263 {offsets = [0, 64], sizes = [2, 32], strides = [1, 1]} : vector<2x128xf32> to vector<2x32xf32>
    %277 = math.tanh %276 : vector<2x32xf32>
    %278 = vector.extract_strided_slice %263 {offsets = [0, 96], sizes = [2, 32], strides = [1, 1]} : vector<2x128xf32> to vector<2x32xf32>
    %279 = arith.negf %278 : vector<2x32xf32>
    %280 = math.exp %279 : vector<2x32xf32>
    %cst_94 = arith.constant 1.000000e+00 : f32
    %281 = vector.broadcast %cst_94 : f32 to vector<2x32xf32>
    %282 = arith.addf %281, %280 : vector<2x32xf32>
    %283 = arith.divf %281, %282 : vector<2x32xf32>
    %284 = arith.mulf %275, %245 : vector<2x32xf32>
    %285 = arith.mulf %269, %277 : vector<2x32xf32>
    %286 = arith.addf %284, %285 : vector<2x32xf32>
    %287 = math.tanh %286 : vector<2x32xf32>
    %288 = arith.mulf %283, %287 : vector<2x32xf32>
    %289 = arith.index_cast %c6_i32 : i32 to index
    %c0_95 = arith.constant 0 : index
    %c0_96 = arith.constant 0 : index
    %290 = vector.load %arg5[%289, %c0_95, %c0_96] : memref<8x2x32xf32, #tpu.memory_space<vmem>>, vector<1x2x32xf32>
    %291 = vector.shape_cast %290 : vector<1x2x32xf32> to vector<2x32xf32>
    %292 = vector.shape_cast %288 : vector<2x32xf32> to vector<1x2x32xf32>
    tpu.vector_store %arg5[%289, %c0_95, %c0_96], %292 {strides = array<i32>} : memref<8x2x32xf32, #tpu.memory_space<vmem>>, vector<1x2x32xf32>,
    %c7_i32 = arith.constant 7 : i32
    %293 = arith.index_cast %c7_i32 : i32 to index
    %c0_97 = arith.constant 0 : index
    %c0_98 = arith.constant 0 : index
    %294 = vector.load %arg1[%293, %c0_97, %c0_98] : memref<8x2x32xf32, #tpu.memory_space<vmem>>, vector<1x2x32xf32>
    %295 = vector.shape_cast %294 : vector<1x2x32xf32> to vector<2x32xf32>
    %296 = arith.truncf %295 : vector<2x32xf32> to vector<2x32xbf16>
    %c0_99 = arith.constant 0 : index
    %c0_100 = arith.constant 0 : index
    %297 = vector.load %arg6[%c0_99, %c0_100] : memref<32x128xbf16, #tpu.memory_space<vmem>>, vector<32x128xbf16>
    %cst_101 = arith.constant dense<0.000000e+00> : vector<2x128xf32>
    %298 = tpu.matmul %296, %297, %cst_101 {dimension_numbers = #tpu.dot_dimension_numbers<[1], [0], [0], [1], [0, 0, 1, 1], [], []>} : vector<2x32xbf16>, vector<32x128xbf16>, vector<2x128xf32> -> vector<2x128xf32>
    %299 = arith.truncf %288 : vector<2x32xf32> to vector<2x32xbf16>
    %c0_102 = arith.constant 0 : index
    %c0_103 = arith.constant 0 : index
    %300 = vector.load %arg7[%c0_102, %c0_103] : memref<32x128xbf16, #tpu.memory_space<vmem>>, vector<32x128xbf16>
    %cst_104 = arith.constant dense<0.000000e+00> : vector<2x128xf32>
    %301 = tpu.matmul %299, %300, %cst_104 {dimension_numbers = #tpu.dot_dimension_numbers<[1], [0], [0], [1], [0, 0, 1, 1], [], []>} : vector<2x32xbf16>, vector<32x128xbf16>, vector<2x128xf32> -> vector<2x128xf32>
    %302 = arith.addf %298, %301 : vector<2x128xf32>
    %303 = vector.broadcast %3 : vector<1x128xf32> to vector<2x128xf32>
    %304 = arith.addf %302, %303 : vector<2x128xf32>
    %305 = vector.extract_strided_slice %304 {offsets = [0, 0], sizes = [2, 32], strides = [1, 1]} : vector<2x128xf32> to vector<2x32xf32>
    %306 = arith.negf %305 : vector<2x32xf32>
    %307 = math.exp %306 : vector<2x32xf32>
    %cst_105 = arith.constant 1.000000e+00 : f32
    %308 = vector.broadcast %cst_105 : f32 to vector<2x32xf32>
    %309 = arith.addf %308, %307 : vector<2x32xf32>
    %310 = arith.divf %308, %309 : vector<2x32xf32>
    %311 = vector.extract_strided_slice %304 {offsets = [0, 32], sizes = [2, 32], strides = [1, 1]} : vector<2x128xf32> to vector<2x32xf32>
    %312 = arith.negf %311 : vector<2x32xf32>
    %313 = math.exp %312 : vector<2x32xf32>
    %cst_106 = arith.constant 1.000000e+00 : f32
    %314 = vector.broadcast %cst_106 : f32 to vector<2x32xf32>
    %315 = arith.addf %314, %313 : vector<2x32xf32>
    %316 = arith.divf %314, %315 : vector<2x32xf32>
    %317 = vector.extract_strided_slice %304 {offsets = [0, 64], sizes = [2, 32], strides = [1, 1]} : vector<2x128xf32> to vector<2x32xf32>
    %318 = math.tanh %317 : vector<2x32xf32>
    %319 = vector.extract_strided_slice %304 {offsets = [0, 96], sizes = [2, 32], strides = [1, 1]} : vector<2x128xf32> to vector<2x32xf32>
    %320 = arith.negf %319 : vector<2x32xf32>
    %321 = math.exp %320 : vector<2x32xf32>
    %cst_107 = arith.constant 1.000000e+00 : f32
    %322 = vector.broadcast %cst_107 : f32 to vector<2x32xf32>
    %323 = arith.addf %322, %321 : vector<2x32xf32>
    %324 = arith.divf %322, %323 : vector<2x32xf32>
    %325 = arith.mulf %316, %286 : vector<2x32xf32>
    %326 = arith.mulf %310, %318 : vector<2x32xf32>
    %327 = arith.addf %325, %326 : vector<2x32xf32>
    %328 = math.tanh %327 : vector<2x32xf32>
    %329 = arith.mulf %324, %328 : vector<2x32xf32>
    %330 = arith.index_cast %c7_i32 : i32 to index
    %c0_108 = arith.constant 0 : index
    %c0_109 = arith.constant 0 : index
    %331 = vector.load %arg5[%330, %c0_108, %c0_109] : memref<8x2x32xf32, #tpu.memory_space<vmem>>, vector<1x2x32xf32>
    %332 = vector.shape_cast %331 : vector<1x2x32xf32> to vector<2x32xf32>
    %333 = vector.shape_cast %329 : vector<2x32xf32> to vector<1x2x32xf32>
    tpu.vector_store %arg5[%330, %c0_108, %c0_109], %333 {strides = array<i32>} : memref<8x2x32xf32, #tpu.memory_space<vmem>>, vector<1x2x32xf32>,
    %c8_i32 = arith.constant 8 : i32
    %c0_110 = arith.constant 0 : index
    %c0_111 = arith.constant 0 : index
    %334 = vector.load %arg8[%c0_110, %c0_111] : memref<2x32xf32, #tpu.memory_space<vmem>>, vector<2x32xf32>
    tpu.vector_store %arg8[%c0_110, %c0_111], %329 {strides = array<i32>} : memref<2x32xf32, #tpu.memory_space<vmem>>, vector<2x32xf32>,
    %c0_112 = arith.constant 0 : index
    %c0_113 = arith.constant 0 : index
    %335 = vector.load %arg9[%c0_112, %c0_113] : memref<2x32xf32, #tpu.memory_space<vmem>>, vector<2x32xf32>
    tpu.vector_store %arg9[%c0_112, %c0_113], %327 {strides = array<i32>} : memref<2x32xf32, #tpu.memory_space<vmem>>, vector<2x32xf32>,
    return
  }
  func.func @transform_0(%arg0: i32) -> (i32, i32, i32) {
    %c0_i32 = arith.constant 0 : i32
    %c0_i32_0 = arith.constant 0 : i32
    %c0_i32_1 = arith.constant 0 : i32
    return %arg0, %c0_i32, %c0_i32_0 : i32, i32, i32
  }
  func.func @transform_3(%arg0: i32) -> (i32, i32) {
    %c0_i32 = arith.constant 0 : i32
    %c0_i32_0 = arith.constant 0 : i32
    %c0_i32_1 = arith.constant 0 : i32
    return %c0_i32, %c0_i32_0 : i32, i32
  }
  func.func @transform_4(%arg0: i32) -> (i32, i32, i32) {
    %c0_i32 = arith.constant 0 : i32
    %c0_i32_0 = arith.constant 0 : i32
    %c0_i32_1 = arith.constant 0 : i32
    return %arg0, %c0_i32, %c0_i32_0 : i32, i32, i32
  }
}

</mosaic_0001>

<bundles_post_ra>
// kernel: tpu_custom_call.1
= control target key start
LH: loop header
LB: loop body
LE: loop exit
PB: predicated region body
PF: predicated region fallthrough
CT: control target
= control target key end

     0   :  { %9 = vsyncpa [#allocation8], 0  ;;  %s2018_s0 = inlined_call_operand.hbm [shape: f32[8,2,32], index: 0, kind: input, shape index: {}]   ;;  %s2019_s1 = inlined_call_operand.hbm [shape: bf16[32,128], index: 1, kind: input, shape index: {}]   ;;  %s2020_s2 = inlined_call_operand.hbm [shape: bf16[32,128], index: 2, kind: input, shape index: {}]   ;;  %s2021_s3 = inlined_call_operand.vmem [shape: f32[1,128], index: 3, kind: input, shape index: {}]   ;;  %s2022_s4 = inlined_call_operand.hbm [shape: f32[8,2,32], index: 4, kind: output, shape index: {}]  }
   0x1   :  { %10 = vsyncpa [#allocation9], 0  ;;  %s1788_s15 = smov [#allocation7]  }
   0x2   :  { %s16_s16 = sshll.u32 %s1788_s15, 4  ;;  %s17_s16 = int_to_ptr.vmem [resolvable:$true] %s16_s16 }
   0x3   :  { %s1708_s17 = scalar_lea.vmem %s17_s16, 256  ;;  %p1713_p1 = scmp.lt.s32.totalorder %s17_s16, %s17_s16 }
   0x4   :  { %p1709_p0 = scmp.ne.s32.totalorder %s17_s16, %s1708_s17  ;;  %p1714_p2 = scmp.lt.s32.totalorder %s1708_s17, %s1708_s17 }
   0x6   :  { %p1715_p3 = por %p1714_p2, %p1713_p1 }
   0x8   :  { %p1716_p4 = pnand %p1715_p3, %p1709_p0 }
   0xa   :  { %1719 = shalt.err (!%p1716_p4)
}
   0xb   :  { %s1789_s18 = smov 32   ;;  %s1790_s19 = smov 2  }
   0xc   :  { %22 = dma.hbm_to_vmem [thread:$0]  %s2018_s0, 256, %s17_s16, [#allocation8], %s1789_s18, %s1789_s18, %s1790_s19  }
   0xd   :  { %1780 = dma.done.wait [#allocation8], 256  }
   0xe   :  { %1781 = vsyncadd [#allocation8], 4294967040  ;;  %vm33_vm0 = vcmask 254976   ;;  %s1791_s22 = smov [#allocation2]   ;;  %v1792_v0 = vmov 0.0   ;;  %s1793_s24 = smov [#allocation3]  }
   0xf   :  { %s43_s23 = sshll.u32 %s1791_s22, 4  ;;  %34 = vst.msk [vmem:[#allocation4] sm:$0x3] %vm33_vm0, %v1792_v0  ;;  %35 = vst.msk [vmem:[#allocation5] sm:$0x3] %vm33_vm0, %v1792_v0  ;;  %s55_s25 = sshll.u32 %s1793_s24, 4  ;;  %s44_s23 = int_to_ptr.vmem [resolvable:$true] %s43_s23  ;;  %s56_s25 = int_to_ptr.vmem [resolvable:$true] %s55_s25 }
  0x10   :  { %s1728_s26 = scalar_lea.vmem %s44_s23, 256  ;;  %p1733_p6 = scmp.lt.s32.totalorder %s44_s23, %s44_s23 }
  0x11   :  { %p1729_p5 = scmp.ne.s32.totalorder %s44_s23, %s1728_s26  ;;  %p1734_p7 = scmp.lt.s32.totalorder %s1728_s26, %s1728_s26 }
  0x13   :  { %p1735_p8 = por %p1734_p7, %p1733_p6 }
  0x15   :  { %p1736_p9 = pnand %p1735_p8, %p1729_p5 }
  0x17   :  { %1739 = shalt.err (!%p1736_p9)  }
  0x18   :  { %46 = dma.hbm_to_vmem [thread:$0]  %s2019_s1, 256, %s44_s23, [#allocation6] }
  0x19   :  { %s1748_s28 = scalar_lea.vmem %s56_s25, 256  ;;  %p1753_p11 = scmp.lt.s32.totalorder %s56_s25, %s56_s25 }
  0x1a   :  { %p1749_p10 = scmp.ne.s32.totalorder %s56_s25, %s1748_s28  ;;  %p1754_p12 = scmp.lt.s32.totalorder %s1748_s28, %s1748_s28 }
  0x1c   :  { %p1755_p13 = por %p1754_p12, %p1753_p11 }
  0x1e   :  { %p1756_p0 = pnand %p1755_p13, %p1749_p10 }
  0x20   :  { %1759 = shalt.err (!%p1756_p0)  }
  0x21   :  { %58 = dma.hbm_to_vmem [thread:$0]  %s2020_s2, 256, %s56_s25, [#allocation6 + $0x1] }
  0x22   :  { %1782 = dma.done.wait [#allocation6], 256 }
  0x23   :  { %1783 = vsyncadd [#allocation6], 4294967040 }
  0x24   :  { %1784 = dma.done.wait [#allocation6 + $0x1], 256 }
  0x25   :  { %1785 = vsyncadd [#allocation6 + $0x1], 4294967040  ;;  %1466 = vmatprep.subr.bf16.mxu0 %v1792_v0  ;;  %1474 = vmatprep.subr.bf16.mxu1 %v1792_v0  ;;  %vm1794_vm1 = vmmov 0   ;;  %v1604_v1 = vld [vmem:[#allocation3 + $0x8] sm:$0xff]   ;;  %v1605_v2 = vld [vmem:[#allocation2 + $0x8] sm:$0xff]   ;;  %vm91_vm2 = vcmask 261120  }
  0x26   :  { %1470 = vmatprep.mubr.msk.bf16.mxu0 %vm1794_vm1, %v1792_v0  ;;  %1478 = vmatprep.mubr.msk.bf16.mxu1 %vm1794_vm1, %v1792_v0  ;;  %v1606_v3 = vld [vmem:[#allocation3] sm:$0xff]   ;;  %v1607_v4 = vld [vmem:[#allocation2] sm:$0xff]   ;;  %s1795_s5 = smov 64   ;;  %v1608_v32 = vld [vmem:[#allocation2 + $0x8] sm:$0xff]   ;;  %s1797_s6 = smov [#allocation10]  }
  0x27   :  { %1467 = vmatpush3.bf16.msra.mxu0 %v1604_v1  ;;  %1475 = vmatpush3.bf16.msra.mxu1 %v1605_v2  ;;  %v66_v5 = vld [vmem:[#allocation4] sm:$0x3]  ;;  %v68_v6 = vld [vmem:[#allocation7] sm:$0x3]  ;;  %v67_v21 = vld [vmem:[#allocation5] sm:$0x3] }
  0x28   :  { %1468 = vmatprep.subr.bf16.mxu0 %v1792_v0  ;;  %1476 = vmatprep.subr.bf16.mxu1 %v1792_v0  ;;  %v74_v7 = vpack.c.bf16 %v66_v5, %v66_v5  ;;  %v69_v8 = vpack.c.bf16 %v68_v6, %v68_v6  ;;  %v1858_v10 = vld [vmem:[%s2021_s3] ss:$0 sm:$0xff]  ;;  %v1610_v33 = vld [vmem:[#allocation3 + $0x8] sm:$0xff]   ;;  %v232_v35 = vld [vmem:[#allocation7 + $0x2] sm:$0x3]  ;;  %s1796_s3 = smov 96  }
  0x29   :  { %v1609_v34 = vld [vmem:[#allocation2] sm:$0xff]   ;;  %v1611_v36 = vld [vmem:[#allocation3] sm:$0xff]   ;;  %v233_v37 = vpack.c.bf16 %v232_v35, %v232_v35  ;;  %v1612_v63 = vld [vmem:[#allocation2 + $0x8] sm:$0xff]   ;;  %s1334_s7 = sshll.u32 %s1797_s6, 4  ;;  %s1335_s7 = int_to_ptr.vmem [resolvable:$true] %s1334_s7 }
  0x2a   :  { %v1614_v1 = vld [vmem:[#allocation3 + $0x8] sm:$0xff]   ;;  %v1613_v2 = vld [vmem:[#allocation2] sm:$0xff]   ;;  %v544_v35 = vld [vmem:[#allocation7 + $0x6] sm:$0x3]  ;;  %s1760_s8 = scalar_lea.vmem %s1335_s7, 256  ;;  %p1765_p2 = scmp.lt.s32.totalorder %s1335_s7, %s1335_s7 }
  0x2b   :  { %1469 = vmatpush3.bf16.msra.mxu0 %v1606_v3  ;;  %1477 = vmatpush3.bf16.msra.mxu1 %v1607_v4  ;;  %v388_v3 = vld [vmem:[#allocation7 + $0x4] sm:$0x3]  ;;  %v1615_v4 = vld [vmem:[#allocation3] sm:$0xff]   ;;  %p1761_p1 = scmp.ne.s32.totalorder %s1335_s7, %s1760_s8  ;;  %p1766_p3 = scmp.lt.s32.totalorder %s1760_s8, %s1760_s8 }
  0x2c   :  { %1482 = vmatprep.subr.bf16.mxu0 %v1792_v0  ;;  %1490 = vmatprep.subr.bf16.mxu1 %v1792_v0  ;;  %v389_v5 = vpack.c.bf16 %v388_v3, %v388_v3  ;;  %v1621_v3 = vld [vmem:[#allocation2] sm:$0xff]  }
  0x2d   :  { %p1767_p4 = por %p1766_p3, %p1765_p2 }
  0x2e   :  { %1471 = vmatmul.mubr.msk.bf16.vlgmr.msra.gmra.mxu0 %vm91_vm2, %v74_v7  ;;  %1479 = vmatmul.mubr.msk.bf16.vlgmr.msra.gmra.mxu1 %vm91_vm2, %v69_v8 }
  0x2f   :  { %1486 = vmatprep.mubr.msk.bf16.mxu0 %vm1794_vm1, %v1792_v0  ;;  %1494 = vmatprep.mubr.msk.bf16.mxu1 %vm1794_vm1, %v1792_v0  ;;  %p1768_p5 = pnand %p1767_p4, %p1761_p1 }
  0x30   :  { %1491 = vmatpush3.bf16.msra.mxu1 %v1608_v32  ;;  %1483 = vmatpush3.bf16.msra.mxu0 %v1610_v33  ;;  %v1616_v32 = vld [vmem:[#allocation2 + $0x8] sm:$0xff]   ;;  %v1618_v33 = vld [vmem:[#allocation3 + $0x8] sm:$0xff]  }
  0x31   :  { %1492 = vmatprep.subr.bf16.mxu1 %v1792_v0  ;;  %1484 = vmatprep.subr.bf16.mxu0 %v1792_v0 }
  0x34   :  { %1493 = vmatpush3.bf16.msra.mxu1 %v1609_v34  ;;  %1485 = vmatpush3.bf16.msra.mxu0 %v1611_v36  ;;  %v1617_v34 = vld [vmem:[#allocation2] sm:$0xff]   ;;  %v1619_v36 = vld [vmem:[#allocation3] sm:$0xff]  }
  0x35   :  { %1506 = vmatprep.subr.bf16.mxu1 %v1792_v0  ;;  %1498 = vmatprep.subr.bf16.mxu0 %v1792_v0 }
  0x37   :  { %1495 = vmatmul.mubr.msk.bf16.vlgmr.msra.gmra.mxu1 %vm91_vm2, %v233_v37  ;;  %v545_v37 = vpack.c.bf16 %v544_v35, %v544_v35  ;;  %v1626_v35 = vld [vmem:[#allocation3 + $0x8] sm:$0xff]  }
  0x38   :  { %1510 = vmatprep.mubr.msk.bf16.mxu1 %vm1794_vm1, %v1792_v0  ;;  %1507 = vmatpush3.bf16.msra.mxu1 %v1612_v63 }
  0x39   :  { %1508 = vmatprep.subr.bf16.mxu1 %v1792_v0 }
  0x3c   :  { %1509 = vmatpush3.bf16.msra.mxu1 %v1613_v2  ;;  %v1622_v2 = vld [vmem:[#allocation3 + $0x8] sm:$0xff]  }
  0x3d   :  { %1522 = vmatprep.subr.bf16.mxu1 %v1792_v0 }
  0x3f   :  { %1511 = vmatmul.mubr.msk.bf16.vlgmr.msra.gmra.mxu1 %vm91_vm2, %v389_v5  ;;  %v1623_v5 = vld [vmem:[#allocation3] sm:$0xff]  }
  0x40   :  { %1526 = vmatprep.mubr.msk.bf16.mxu1 %vm1794_vm1, %v1792_v0  ;;  %1523 = vmatpush3.bf16.msra.mxu1 %v1616_v32 }
  0x41   :  { %1524 = vmatprep.subr.bf16.mxu1 %v1792_v0 }
  0x44   :  { %1525 = vmatpush3.bf16.msra.mxu1 %v1617_v34  ;;  %v1624_v34 = vld [vmem:[#allocation2 + $0x8] sm:$0xff]  }
  0x45   :  { %1538 = vmatprep.subr.bf16.mxu1 %v1792_v0 }
  0x47   :  { %1527 = vmatmul.mubr.msk.bf16.vlgmr.msra.gmra.mxu1 %vm91_vm2, %v545_v37  ;;  %v856_v37 = vld [vmem:[#allocation7 + $0xa] sm:$0x3] }
  0x48   :  { %1542 = vmatprep.mubr.msk.bf16.mxu1 %vm1794_vm1, %v1792_v0 }
  0xee   :  { %v129_v9 = vpop.f32.mrf.mxu0  ;;  %v184_v11 = vpop.f32.mrf.mxu1 }
  0xef   :  { %v185_v12 = vadd.f32 %v184_v11, %v129_v9 }
  0xf0   :  { %v1472_v13 = vpop.f32.mrf.mxu0  ;;  %v1480_v14 = vpop.f32.mrf.mxu1 }
  0xf1   :  { %v196_v15 = vadd.f32 %v1858_v10, %v185_v12 }
  0xf2   :  { %v132_v16 = vpop.f32.mrf.mxu0  ;;  %v187_v17 = vpop.f32.mrf.mxu1 }
  0xf3   :  { %1636 = vtanh.f32 %v196_v15  ;;  %v1366_v22 = vmul.f32 -1.442695, %v196_v15 }
  0xf4   :  { %v1473_v18 = vpop.f32.mrf.mxu0  ;;  %v1481_v19 = vpop.f32.mrf.mxu1 }
  0xf5   :  { %1638 = vpow2.f32 %v1366_v22 }
  0xf7   :  { %v350_v42 = vpop.f32.mrf.mxu1 }
  0xf9   :  { %v1496_v43 = vpop.f32.mrf.mxu1 }
  0xfb   :  { %v353_v44 = vpop.f32.mrf.mxu1 }
  0xfd   :  { %v1497_v45 = vpop.f32.mrf.mxu1 }
  0xff   :  { %v506_v11 = vpop.f32.mrf.mxu1 }
 0x100   :  { %v1637_v20 = vpop.eup %1636 }
 0x101   :  { %210 = vrot.lane.b32.xlu0 %v1637_v20, %s1795_s5  ;;  %v1512_v12 = vpop.f32.mrf.mxu1 }
 0x102   :  { %v1639_v23 = vpop.eup %1638 }
 0x103   :  { %v200_v24 = vadd.f32 1.0, %v1639_v23  ;;  %v509_v13 = vpop.f32.mrf.mxu1 }
 0x105   :  { %205 = vrot.lane.b32.xlu0 %v67_v21, %s1789_s18  ;;  %1640 = vrcp.f32 %v200_v24  ;;  %v1513_v14 = vpop.f32.mrf.mxu1 }
 0x107   :  { %v662_v43 = vpop.f32.mrf.mxu1 }
 0x109   :  { %v1528_v44 = vpop.f32.mrf.mxu1 }
 0x10b   :  { %v665_v45 = vpop.f32.mrf.mxu1 }
 0x112   :  { %v1641_v25 = vpop.eup %1640 }
 0x173   :  { %v211_v26 = vpop.permute.xlu0 %210 }
 0x174   :  { %v213_v27 = vmul.f32 %v1641_v25, %v211_v26 }
 0x176   :  { %215 = vrot.lane.b32.xlu1 %v213_v27, %s1789_s18 }
 0x177   :  { %v206_v28 = vpop.permute.xlu0 %205 }
 0x178   :  { %v208_v29 = vmul.f32 %v1641_v25, %v206_v28 }
 0x1e8   :  { %v216_v30 = vpop.permute.xlu1 %215 }
 0x1e9   :  { %v218_v31 = vadd.f32 %v216_v30, %v208_v29 }
 0x1eb   :  { %1642 = vtanh.f32 %v218_v31 }
 0x1f8   :  { %v1643_v38 = vpop.eup %1642 }
 0x1f9   :  { %221 = vrot.lane.b32.xlu1 %v1643_v38, %s1795_s5 }
 0x26b   :  { %v222_v39 = vpop.permute.xlu1 %221 }
 0x26c   :  { %v1872_v40 = vmul.f32 %v1641_v25, %v222_v39 }
 0x26e   :  { %v238_v41 = vpack.c.bf16 %v1872_v40, %v1872_v40 }
 0x270   :  { %244 = vrot.lane.b32.xlu0 %v238_v41, %s1789_s18 }
 0x2e2   :  { %v245_v46 = vpop.permute.xlu0 %244 }
 0x2e3   :  { %1487 = vmatmul.mubr.msk.bf16.vlgmr.msra.gmra.mxu0 %vm91_vm2, %v245_v46  ;;  %v1529_v46 = vpop.f32.mrf.mxu1 }
 0x2e4   :  { %1502 = vmatprep.mubr.msk.bf16.mxu0 %vm1794_vm1, %v1792_v0  ;;  %1499 = vmatpush3.bf16.msra.mxu0 %v1614_v1  ;;  %v1620_v1 = vld [vmem:[#allocation2 + $0x8] sm:$0xff]  }
 0x2e5   :  { %1500 = vmatprep.subr.bf16.mxu0 %v1792_v0  ;;  %1539 = vmatpush3.bf16.msra.mxu1 %v1620_v1 }
 0x2e6   :  { %1540 = vmatprep.subr.bf16.mxu1 %v1792_v0 }
 0x2e8   :  { %1501 = vmatpush3.bf16.msra.mxu0 %v1615_v4  ;;  %v700_v4 = vld [vmem:[#allocation7 + $0x8] sm:$0x3] }
 0x2e9   :  { %1514 = vmatprep.subr.bf16.mxu0 %v1792_v0  ;;  %1541 = vmatpush3.bf16.msra.mxu1 %v1621_v3 }
 0x2ea   :  { %1554 = vmatprep.subr.bf16.mxu1 %v1792_v0 }
 0x3a3   :  { %v295_v47 = vpop.f32.mrf.mxu0 }
 0x3a4   :  { %v351_v48 = vadd.f32 %v350_v42, %v295_v47 }
 0x3a5   :  { %v1488_v49 = vpop.f32.mrf.mxu0 }
 0x3a6   :  { %v356_v50 = vadd.f32 %v1858_v10, %v351_v48 }
 0x3a7   :  { %v298_v51 = vpop.f32.mrf.mxu0 }
 0x3a8   :  { %1644 = vtanh.f32 %v356_v50  ;;  %v1373_v54 = vmul.f32 -1.442695, %v356_v50 }
 0x3a9   :  { %v1489_v52 = vpop.f32.mrf.mxu0 }
 0x3aa   :  { %1646 = vpow2.f32 %v1373_v54 }
 0x3b5   :  { %v1645_v53 = vpop.eup %1644 }
 0x3b6   :  { %366 = vrot.lane.b32.xlu1 %v1645_v53, %s1795_s5 }
 0x3b7   :  { %v1647_v55 = vpop.eup %1646 }
 0x3b8   :  { %v360_v56 = vadd.f32 1.0, %v1647_v55 }
 0x3ba   :  { %1648 = vrcp.f32 %v360_v56 }
 0x3c7   :  { %v1649_v57 = vpop.eup %1648 }
 0x3c8   :  { %v364_v60 = vmul.f32 %v1649_v57, %v218_v31 }
 0x428   :  { %v367_v58 = vpop.permute.xlu1 %366 }
 0x429   :  { %v369_v59 = vmul.f32 %v1649_v57, %v367_v58 }
 0x42b   :  { %371 = vrot.lane.b32.xlu0 %v369_v59, %s1789_s18 }
 0x49d   :  { %v372_v61 = vpop.permute.xlu0 %371 }
 0x49e   :  { %v374_v62 = vadd.f32 %v372_v61, %v364_v60 }
 0x4a0   :  { %1650 = vtanh.f32 %v374_v62 }
 0x4ad   :  { %v1651_v6 = vpop.eup %1650 }
 0x4ae   :  { %377 = vrot.lane.b32.xlu1 %v1651_v6, %s1795_s5  ;;  %v701_v6 = vpack.c.bf16 %v700_v4, %v700_v4  ;;  %v1628_v4 = vld [vmem:[#allocation2 + $0x8] sm:$0xff]  }
 0x4b0   :  { %1543 = vmatmul.mubr.msk.bf16.vlgmr.msra.gmra.mxu1 %vm91_vm2, %v701_v6  ;;  %v1629_v6 = vld [vmem:[#allocation2] sm:$0xff]  }
 0x4b1   :  { %1558 = vmatprep.mubr.msk.bf16.mxu1 %vm1794_vm1, %v1792_v0  ;;  %1555 = vmatpush3.bf16.msra.mxu1 %v1624_v34 }
 0x4b2   :  { %1556 = vmatprep.subr.bf16.mxu1 %v1792_v0 }
 0x520   :  { %v378_v7 = vpop.permute.xlu1 %377 }
 0x521   :  { %v1891_v8 = vmul.f32 %v1649_v57, %v378_v7 }
 0x523   :  { %v394_v9 = vpack.c.bf16 %v1891_v8, %v1891_v8 }
 0x525   :  { %400 = vrot.lane.b32.xlu0 %v394_v9, %s1789_s18 }
 0x570   :  { %v818_v13 = vpop.f32.mrf.mxu1 }
 0x572   :  { %v1544_v14 = vpop.f32.mrf.mxu1 }
 0x597   :  { %v401_v15 = vpop.permute.xlu0 %400 }
 0x598   :  { %1503 = vmatmul.mubr.msk.bf16.vlgmr.msra.gmra.mxu0 %vm91_vm2, %v401_v15  ;;  %v821_v15 = vpop.f32.mrf.mxu1 }
 0x599   :  { %1518 = vmatprep.mubr.msk.bf16.mxu0 %vm1794_vm1, %v1792_v0  ;;  %1515 = vmatpush3.bf16.msra.mxu0 %v1618_v33 }
 0x59a   :  { %1516 = vmatprep.subr.bf16.mxu0 %v1792_v0 }
 0x59d   :  { %1517 = vmatpush3.bf16.msra.mxu0 %v1619_v36  ;;  %v1625_v36 = vld [vmem:[#allocation2] sm:$0xff]  }
 0x59e   :  { %1530 = vmatprep.subr.bf16.mxu0 %v1792_v0  ;;  %1557 = vmatpush3.bf16.msra.mxu1 %v1625_v36 }
 0x59f   :  { %1570 = vmatprep.subr.bf16.mxu1 %v1792_v0 }
 0x658   :  { %v451_v16 = vpop.f32.mrf.mxu0 }
 0x659   :  { %v507_v17 = vadd.f32 %v506_v11, %v451_v16  ;;  %v1545_v16 = vpop.f32.mrf.mxu1 }
 0x65a   :  { %v1504_v18 = vpop.f32.mrf.mxu0 }
 0x65b   :  { %v512_v19 = vadd.f32 %v1858_v10, %v507_v17 }
 0x65c   :  { %v454_v20 = vpop.f32.mrf.mxu0 }
 0x65d   :  { %1652 = vtanh.f32 %v512_v19  ;;  %v1380_v23 = vmul.f32 -1.442695, %v512_v19 }
 0x65e   :  { %v1505_v21 = vpop.f32.mrf.mxu0 }
 0x65f   :  { %1654 = vpow2.f32 %v1380_v23 }
 0x66a   :  { %v1653_v22 = vpop.eup %1652 }
 0x66b   :  { %522 = vrot.lane.b32.xlu1 %v1653_v22, %s1795_s5 }
 0x66c   :  { %v1655_v24 = vpop.eup %1654 }
 0x66d   :  { %v516_v25 = vadd.f32 1.0, %v1655_v24 }
 0x66f   :  { %1656 = vrcp.f32 %v516_v25 }
 0x67c   :  { %v1657_v26 = vpop.eup %1656 }
 0x67d   :  { %v520_v29 = vmul.f32 %v1657_v26, %v374_v62 }
 0x6dd   :  { %v523_v27 = vpop.permute.xlu1 %522 }
 0x6de   :  { %v525_v28 = vmul.f32 %v1657_v26, %v523_v27 }
 0x6e0   :  { %527 = vrot.lane.b32.xlu0 %v525_v28, %s1789_s18 }
 0x752   :  { %v528_v30 = vpop.permute.xlu0 %527 }
 0x753   :  { %v530_v31 = vadd.f32 %v528_v30, %v520_v29 }
 0x755   :  { %1658 = vtanh.f32 %v530_v31 }
 0x762   :  { %v1659_v38 = vpop.eup %1658 }
 0x763   :  { %533 = vrot.lane.b32.xlu1 %v1659_v38, %s1795_s5  ;;  %v1627_v38 = vld [vmem:[#allocation3] sm:$0xff]  }
 0x7d5   :  { %v534_v39 = vpop.permute.xlu1 %533 }
 0x7d6   :  { %v1910_v41 = vmul.f32 %v1657_v26, %v534_v39  ;;  %v857_v39 = vpack.c.bf16 %v856_v37, %v856_v37 }
 0x7d8   :  { %v550_v42 = vpack.c.bf16 %v1910_v41, %v1910_v41  ;;  %1559 = vmatmul.mubr.msk.bf16.vlgmr.msra.gmra.mxu1 %vm91_vm2, %v857_v39  ;;  %v1634_v39 = vld [vmem:[#allocation3 + $0x8] sm:$0xff]  }
 0x7d9   :  { %1574 = vmatprep.mubr.msk.bf16.mxu1 %vm1794_vm1, %v1792_v0  ;;  %1571 = vmatpush3.bf16.msra.mxu1 %v1628_v4 }
 0x7da   :  { %556 = vrot.lane.b32.xlu0 %v550_v42, %s1789_s18  ;;  %1572 = vmatprep.subr.bf16.mxu1 %v1792_v0 }
 0x7dd   :  { %1573 = vmatpush3.bf16.msra.mxu1 %v1629_v6 }
 0x7de   :  { %1586 = vmatprep.subr.bf16.mxu1 %v1792_v0 }
 0x84c   :  { %v557_v47 = vpop.permute.xlu0 %556 }
 0x84d   :  { %1519 = vmatmul.mubr.msk.bf16.vlgmr.msra.gmra.mxu0 %vm91_vm2, %v557_v47 }
 0x84e   :  { %1534 = vmatprep.mubr.msk.bf16.mxu0 %vm1794_vm1, %v1792_v0  ;;  %1531 = vmatpush3.bf16.msra.mxu0 %v1622_v2 }
 0x84f   :  { %1532 = vmatprep.subr.bf16.mxu0 %v1792_v0 }
 0x852   :  { %1533 = vmatpush3.bf16.msra.mxu0 %v1623_v5  ;;  %v1630_v5 = vld [vmem:[#allocation3 + $0x8] sm:$0xff]  }
 0x853   :  { %1546 = vmatprep.subr.bf16.mxu0 %v1792_v0 }
 0x898   :  { %v974_v46 = vpop.f32.mrf.mxu1 }
 0x89a   :  { %v1560_v47 = vpop.f32.mrf.mxu1 }
 0x90d   :  { %v607_v48 = vpop.f32.mrf.mxu0 }
 0x90e   :  { %v663_v49 = vadd.f32 %v662_v43, %v607_v48  ;;  %v977_v48 = vpop.f32.mrf.mxu1 }
 0x90f   :  { %v1520_v50 = vpop.f32.mrf.mxu0 }
 0x910   :  { %v668_v51 = vadd.f32 %v1858_v10, %v663_v49  ;;  %v1561_v49 = vpop.f32.mrf.mxu1 }
 0x911   :  { %v610_v52 = vpop.f32.mrf.mxu0 }
 0x912   :  { %1660 = vtanh.f32 %v668_v51  ;;  %v1387_v55 = vmul.f32 -1.442695, %v668_v51 }
 0x913   :  { %v1521_v53 = vpop.f32.mrf.mxu0 }
 0x914   :  { %1662 = vpow2.f32 %v1387_v55 }
 0x91f   :  { %v1661_v54 = vpop.eup %1660 }
 0x920   :  { %678 = vrot.lane.b32.xlu1 %v1661_v54, %s1795_s5 }
 0x921   :  { %v1663_v56 = vpop.eup %1662 }
 0x922   :  { %v672_v57 = vadd.f32 1.0, %v1663_v56 }
 0x924   :  { %1664 = vrcp.f32 %v672_v57 }
 0x931   :  { %v1665_v58 = vpop.eup %1664 }
 0x932   :  { %v676_v61 = vmul.f32 %v1665_v58, %v530_v31 }
 0x992   :  { %v679_v59 = vpop.permute.xlu1 %678 }
 0x993   :  { %v681_v60 = vmul.f32 %v1665_v58, %v679_v59 }
 0x995   :  { %683 = vrot.lane.b32.xlu0 %v681_v60, %s1789_s18 }
 0xa07   :  { %v684_v62 = vpop.permute.xlu0 %683 }
 0xa08   :  { %v686_v63 = vadd.f32 %v684_v62, %v676_v61 }
 0xa0a   :  { %1666 = vtanh.f32 %v686_v63 }
 0xa17   :  { %v1667_v7 = vpop.eup %1666 }
 0xa18   :  { %689 = vrot.lane.b32.xlu1 %v1667_v7, %s1795_s5  ;;  %v1012_v7 = vld [vmem:[#allocation7 + $0xc] sm:$0x3] }
 0xa8a   :  { %v690_v9 = vpop.permute.xlu1 %689 }
 0xa8b   :  { %v1929_v11 = vmul.f32 %v1665_v58, %v690_v9  ;;  %v1631_v9 = vld [vmem:[#allocation3] sm:$0xff]  }
 0xa8d   :  { %v706_v12 = vpack.c.bf16 %v1929_v11, %v1929_v11 }
 0xa8f   :  { %712 = vrot.lane.b32.xlu0 %v706_v12, %s1789_s18  ;;  %v1013_v12 = vpack.c.bf16 %v1012_v7, %v1012_v7 }
 0xa91   :  { %1575 = vmatmul.mubr.msk.bf16.vlgmr.msra.gmra.mxu1 %vm91_vm2, %v1013_v12 }
 0xa92   :  { %1590 = vmatprep.mubr.msk.bf16.mxu1 %vm1794_vm1, %v1792_v0 }
 0xb01   :  { %v713_v17 = vpop.permute.xlu0 %712 }
 0xb02   :  { %1535 = vmatmul.mubr.msk.bf16.vlgmr.msra.gmra.mxu0 %vm91_vm2, %v713_v17 }
 0xb03   :  { %1550 = vmatprep.mubr.msk.bf16.mxu0 %vm1794_vm1, %v1792_v0  ;;  %1547 = vmatpush3.bf16.msra.mxu0 %v1626_v35 }
 0xb04   :  { %1548 = vmatprep.subr.bf16.mxu0 %v1792_v0 }
 0xb07   :  { %1549 = vmatpush3.bf16.msra.mxu0 %v1627_v38  ;;  %v1632_v38 = vld [vmem:[#allocation2 + $0x8] sm:$0xff]  }
 0xb08   :  { %1562 = vmatprep.subr.bf16.mxu0 %v1792_v0  ;;  %1587 = vmatpush3.bf16.msra.mxu1 %v1632_v38 }
 0xb09   :  { %1588 = vmatprep.subr.bf16.mxu1 %v1792_v0 }
 0xb51   :  { %v1130_v17 = vpop.f32.mrf.mxu1 }
 0xbc2   :  { %v763_v18 = vpop.f32.mrf.mxu0 }
 0xbc3   :  { %v819_v19 = vadd.f32 %v818_v13, %v763_v18  ;;  %v1576_v18 = vpop.f32.mrf.mxu1 }
 0xbc4   :  { %v1536_v20 = vpop.f32.mrf.mxu0 }
 0xbc5   :  { %v824_v21 = vadd.f32 %v1858_v10, %v819_v19  ;;  %v1133_v19 = vpop.f32.mrf.mxu1 }
 0xbc6   :  { %v766_v22 = vpop.f32.mrf.mxu0 }
 0xbc7   :  { %1668 = vtanh.f32 %v824_v21  ;;  %v1394_v25 = vmul.f32 -1.442695, %v824_v21  ;;  %v1577_v20 = vpop.f32.mrf.mxu1 }
 0xbc8   :  { %v1537_v23 = vpop.f32.mrf.mxu0 }
 0xbc9   :  { %1670 = vpow2.f32 %v1394_v25 }
 0xbd4   :  { %v1669_v24 = vpop.eup %1668 }
 0xbd5   :  { %834 = vrot.lane.b32.xlu1 %v1669_v24, %s1795_s5 }
 0xbd6   :  { %v1671_v26 = vpop.eup %1670 }
 0xbd7   :  { %v828_v27 = vadd.f32 1.0, %v1671_v26 }
 0xbd9   :  { %1672 = vrcp.f32 %v828_v27 }
 0xbe6   :  { %v1673_v28 = vpop.eup %1672 }
 0xbe7   :  { %v832_v31 = vmul.f32 %v1673_v28, %v686_v63 }
 0xc47   :  { %v835_v29 = vpop.permute.xlu1 %834 }
 0xc48   :  { %v837_v30 = vmul.f32 %v1673_v28, %v835_v29 }
 0xc4a   :  { %839 = vrot.lane.b32.xlu0 %v837_v30, %s1789_s18 }
 0xcbc   :  { %v840_v32 = vpop.permute.xlu0 %839 }
 0xcbd   :  { %v842_v33 = vadd.f32 %v840_v32, %v832_v31 }
 0xcbf   :  { %1674 = vtanh.f32 %v842_v33 }
 0xccc   :  { %v1675_v42 = vpop.eup %1674 }
 0xccd   :  { %845 = vrot.lane.b32.xlu1 %v1675_v42, %s1795_s5  ;;  %v1633_v42 = vld [vmem:[#allocation2] sm:$0xff]  }
 0xcce   :  { %1589 = vmatpush3.bf16.msra.mxu1 %v1633_v42 }
 0xd3f   :  { %v846_v43 = vpop.permute.xlu1 %845 }
 0xd40   :  { %v1948_v44 = vmul.f32 %v1673_v28, %v846_v43  ;;  %v1168_v43 = vld [vmem:[#allocation7 + $0xe] sm:$0x3] }
 0xd42   :  { %v862_v45 = vpack.c.bf16 %v1948_v44, %v1948_v44 }
 0xd44   :  { %868 = vrot.lane.b32.xlu0 %v862_v45, %s1789_s18  ;;  %v1635_v45 = vld [vmem:[#allocation3] sm:$0xff]  }
 0xdb6   :  { %v869_v50 = vpop.permute.xlu0 %868 }
 0xdb7   :  { %1551 = vmatmul.mubr.msk.bf16.vlgmr.msra.gmra.mxu0 %vm91_vm2, %v869_v50 }
 0xdb8   :  { %1566 = vmatprep.mubr.msk.bf16.mxu0 %vm1794_vm1, %v1792_v0  ;;  %1563 = vmatpush3.bf16.msra.mxu0 %v1630_v5 }
 0xdb9   :  { %1564 = vmatprep.subr.bf16.mxu0 %v1792_v0 }
 0xdbc   :  { %1565 = vmatpush3.bf16.msra.mxu0 %v1631_v9 }
 0xdbd   :  { %1578 = vmatprep.subr.bf16.mxu0 %v1792_v0 }
 0xe77   :  { %v919_v51 = vpop.f32.mrf.mxu0 }
 0xe78   :  { %v975_v52 = vadd.f32 %v974_v46, %v919_v51  ;;  %v1169_v46 = vpack.c.bf16 %v1168_v43, %v1168_v43 }
 0xe79   :  { %v1552_v53 = vpop.f32.mrf.mxu0 }
 0xe7a   :  { %v980_v54 = vadd.f32 %v1858_v10, %v975_v52  ;;  %1591 = vmatmul.mubr.msk.bf16.vlgmr.msra.gmra.mxu1 %vm91_vm2, %v1169_v46 }
 0xe7b   :  { %v922_v55 = vpop.f32.mrf.mxu0 }
 0xe7c   :  { %1676 = vtanh.f32 %v980_v54  ;;  %v1401_v58 = vmul.f32 -1.442695, %v980_v54 }
 0xe7d   :  { %v1553_v56 = vpop.f32.mrf.mxu0 }
 0xe7e   :  { %1678 = vpow2.f32 %v1401_v58 }
 0xe89   :  { %v1677_v57 = vpop.eup %1676 }
 0xe8a   :  { %990 = vrot.lane.b32.xlu1 %v1677_v57, %s1795_s5 }
 0xe8b   :  { %v1679_v59 = vpop.eup %1678 }
 0xe8c   :  { %v984_v60 = vadd.f32 1.0, %v1679_v59 }
 0xe8e   :  { %1680 = vrcp.f32 %v984_v60 }
 0xe9b   :  { %v1681_v61 = vpop.eup %1680 }
 0xe9c   :  { %v988_v1 = vmul.f32 %v1681_v61, %v842_v33 }
 0xefc   :  { %v991_v62 = vpop.permute.xlu1 %990 }
 0xefd   :  { %v993_v63 = vmul.f32 %v1681_v61, %v991_v62 }
 0xeff   :  { %995 = vrot.lane.b32.xlu0 %v993_v63, %s1789_s18 }
 0xf3a   :  { %v1286_v51 = vpop.f32.mrf.mxu1 }
 0xf3c   :  { %v1592_v52 = vpop.f32.mrf.mxu1 }
 0xf3e   :  { %v1289_v53 = vpop.f32.mrf.mxu1 }
 0xf40   :  { %v1593_v54 = vpop.f32.mrf.mxu1 }
 0xf71   :  { %v996_v2 = vpop.permute.xlu0 %995 }
 0xf72   :  { %v998_v3 = vadd.f32 %v996_v2, %v988_v1 }
 0xf74   :  { %1682 = vtanh.f32 %v998_v3 }
 0xf81   :  { %v1683_v13 = vpop.eup %1682 }
 0xf82   :  { %1001 = vrot.lane.b32.xlu1 %v1683_v13, %s1795_s5 }
 0xff4   :  { %v1002_v14 = vpop.permute.xlu1 %1001 }
 0xff5   :  { %v1967_v15 = vmul.f32 %v1681_v61, %v1002_v14 }
 0xff7   :  { %v1018_v16 = vpack.c.bf16 %v1967_v15, %v1967_v15 }
 0xff9   :  { %1024 = vrot.lane.b32.xlu0 %v1018_v16, %s1789_s18 }
0x106b   :  { %v1025_v21 = vpop.permute.xlu0 %1024 }
0x106c   :  { %1567 = vmatmul.mubr.msk.bf16.vlgmr.msra.gmra.mxu0 %vm91_vm2, %v1025_v21 }
0x106d   :  { %1582 = vmatprep.mubr.msk.bf16.mxu0 %vm1794_vm1, %v1792_v0  ;;  %1579 = vmatpush3.bf16.msra.mxu0 %v1634_v39 }
0x106e   :  { %1580 = vmatprep.subr.bf16.mxu0 %v1792_v0 }
0x1071   :  { %1581 = vmatpush3.bf16.msra.mxu0 %v1635_v45 }
0x112c   :  { %v1075_v22 = vpop.f32.mrf.mxu0 }
0x112d   :  { %v1131_v23 = vadd.f32 %v1130_v17, %v1075_v22 }
0x112e   :  { %v1568_v24 = vpop.f32.mrf.mxu0 }
0x112f   :  { %v1136_v25 = vadd.f32 %v1858_v10, %v1131_v23 }
0x1130   :  { %v1078_v26 = vpop.f32.mrf.mxu0 }
0x1131   :  { %1684 = vtanh.f32 %v1136_v25  ;;  %v1408_v29 = vmul.f32 -1.442695, %v1136_v25 }
0x1132   :  { %v1569_v27 = vpop.f32.mrf.mxu0 }
0x1133   :  { %1686 = vpow2.f32 %v1408_v29 }
0x113e   :  { %v1685_v28 = vpop.eup %1684 }
0x113f   :  { %1146 = vrot.lane.b32.xlu1 %v1685_v28, %s1795_s5 }
0x1140   :  { %v1687_v30 = vpop.eup %1686 }
0x1141   :  { %v1140_v31 = vadd.f32 1.0, %v1687_v30 }
0x1143   :  { %1688 = vrcp.f32 %v1140_v31 }
0x1150   :  { %v1689_v32 = vpop.eup %1688 }
0x1151   :  { %v1144_v35 = vmul.f32 %v1689_v32, %v998_v3 }
0x11b1   :  { %v1147_v33 = vpop.permute.xlu1 %1146 }
0x11b2   :  { %v1149_v34 = vmul.f32 %v1689_v32, %v1147_v33 }
0x11b4   :  { %1151 = vrot.lane.b32.xlu0 %v1149_v34, %s1789_s18 }
0x1226   :  { %v1152_v36 = vpop.permute.xlu0 %1151 }
0x1227   :  { %v1154_v37 = vadd.f32 %v1152_v36, %v1144_v35 }
0x1229   :  { %1690 = vtanh.f32 %v1154_v37 }
0x1236   :  { %v1691_v47 = vpop.eup %1690 }
0x1237   :  { %1157 = vrot.lane.b32.xlu1 %v1691_v47, %s1795_s5 }
0x12a9   :  { %v1158_v48 = vpop.permute.xlu1 %1157 }
0x12aa   :  { %v1160_v49 = vmul.f32 %v1689_v32, %v1158_v48 }
0x12ac   :  { %v1174_v50 = vpack.c.bf16 %v1160_v49, %v1160_v49 }
0x12ae   :  { %1180 = vrot.lane.b32.xlu0 %v1174_v50, %s1789_s18 }
0x1320   :  { %v1181_v55 = vpop.permute.xlu0 %1180 }
0x1321   :  { %1583 = vmatmul.mubr.msk.bf16.vlgmr.msra.gmra.mxu0 %vm91_vm2, %v1181_v55 }
0x13e1   :  { %v1231_v0 = vpop.f32.mrf.mxu0 }
0x13e2   :  { %v1287_v56 = vadd.f32 %v1286_v51, %v1231_v0 }
0x13e3   :  { %v1584_v57 = vpop.f32.mrf.mxu0 }
0x13e4   :  { %v1292_v58 = vadd.f32 %v1858_v10, %v1287_v56 }
0x13e5   :  { %v1234_v59 = vpop.f32.mrf.mxu0 }
0x13e6   :  { %1692 = vtanh.f32 %v1292_v58  ;;  %v1415_v62 = vmul.f32 -1.442695, %v1292_v58 }
0x13e7   :  { %v1585_v60 = vpop.f32.mrf.mxu0 }
0x13e8   :  { %1694 = vpow2.f32 %v1415_v62 }
0x13f3   :  { %v1693_v61 = vpop.eup %1692 }
0x13f4   :  { %1302 = vrot.lane.b32.xlu1 %v1693_v61, %s1795_s5 }
0x13f5   :  { %v1695_v63 = vpop.eup %1694 }
0x13f6   :  { %v1296_v1 = vadd.f32 1.0, %v1695_v63 }
0x13f8   :  { %1696 = vrcp.f32 %v1296_v1 }
0x1405   :  { %v1697_v2 = vpop.eup %1696 }
0x1406   :  { %v1300_v10 = vmul.f32 %v1697_v2, %v1154_v37 }
0x1466   :  { %v1303_v3 = vpop.permute.xlu1 %1302 }
0x1467   :  { %v1305_v4 = vmul.f32 %v1697_v2, %v1303_v3 }
0x1469   :  { %1307 = vrot.lane.b32.xlu0 %v1305_v4, %s1789_s18 }
0x146d   :  { %226 = vrot.lane.b32.xlu0 %v1872_v40, %s1789_s18 }
0x1471   :  { %538 = vrot.lane.b32.xlu0 %v1910_v41, %s1789_s18 }
0x1475   :  { %850 = vrot.lane.b32.xlu0 %v1948_v44, %s1789_s18 }
0x1479   :  { %1162 = vrot.lane.b32.xlu0 %v1160_v49, %s1789_s18 }
0x14db   :  { %v1308_v5 = vpop.permute.xlu0 %1307 }
0x14dc   :  { %v1310_v6 = vadd.f32 %v1308_v5, %v1300_v10 }
0x14de   :  { %1698 = vtanh.f32 %v1310_v6  ;;  %1325 = vrot.lane.b32.xlu0 %v1310_v6, %s1796_s3 }
0x14df   :  { %v227_v7 = vpop.permute.xlu0 %226 }
0x14e0   :  { %230 = vst.msk [vmem:[#allocation10] sm:$0x3] %vm33_vm0, %v227_v7 }
0x14e3   :  { %v539_v9 = vpop.permute.xlu0 %538 }
0x14e4   :  { %542 = vst.msk [vmem:[#allocation10 + $0x4] sm:$0x3] %vm33_vm0, %v539_v9 }
0x14e7   :  { %v851_v40 = vpop.permute.xlu0 %850 }
0x14e8   :  { %854 = vst.msk [vmem:[#allocation10 + $0x8] sm:$0x3] %vm33_vm0, %v851_v40 }
0x14eb   :  { %v1699_v41 = vpop.eup %1698  ;;  %v1163_v12 = vpop.permute.xlu0 %1162 }
0x14ec   :  { %1166 = vst.msk [vmem:[#allocation10 + $0xc] sm:$0x3] %vm33_vm0, %v1163_v12  ;;  %1313 = vrot.lane.b32.xlu1 %v1699_v41, %s1795_s5 }
0x14f0   :  { %382 = vrot.lane.b32.xlu1 %v1891_v8, %s1789_s18 }
0x14f4   :  { %694 = vrot.lane.b32.xlu1 %v1929_v11, %s1789_s18 }
0x14f8   :  { %1006 = vrot.lane.b32.xlu1 %v1967_v15, %s1789_s18 }
0x1550   :  { %v1326_v44 = vpop.permute.xlu0 %1325 }
0x1551   :  { %1328 = vst.msk [vmem:[#allocation5] sm:$0x3] %vm33_vm0, %v1326_v44 }
0x155e   :  { %v1314_v13 = vpop.permute.xlu1 %1313 }
0x155f   :  { %v1316_v14 = vmul.f32 %v1697_v2, %v1314_v13 }
0x1561   :  { %1318 = vrot.lane.b32.xlu1 %v1316_v14, %s1789_s18 }
0x1562   :  { %v383_v16 = vpop.permute.xlu1 %382 }
0x1563   :  { %386 = vst.msk [vmem:[#allocation10 + $0x2] sm:$0x3] %vm33_vm0, %v383_v16 }
0x1566   :  { %v695_v17 = vpop.permute.xlu1 %694 }
0x1567   :  { %698 = vst.msk [vmem:[#allocation10 + $0x6] sm:$0x3] %vm33_vm0, %v695_v17 }
0x156a   :  { %v1007_v8 = vpop.permute.xlu1 %1006 }
0x156b   :  { %1010 = vst.msk [vmem:[#allocation10 + $0xa] sm:$0x3] %vm33_vm0, %v1007_v8 }
0x15d3   :  { %v1319_v11 = vpop.permute.xlu1 %1318 }
0x15d4   :  { %1322 = vst.msk [vmem:[#allocation10 + $0xe] sm:$0x3] %vm33_vm0, %v1319_v11  ;;  %1323 = vst.msk [vmem:[#allocation4] sm:$0x3] %vm33_vm0, %v1319_v11 }
0x15d5   :  { %1771 = shalt.err (!%p1768_p5)
}
0x15d6   :  { %1340 = dma.vmem_to_hbm [thread:$0]  %s1335_s7, 256, %s2022_s4, [#allocation9], %s1789_s18, %s1789_s18, %s1790_s19  }
0x15d7   :  { %1786 = dma.done.wait [#allocation9], 256  }
0x15d8   :  { %1787 = vsyncadd [#allocation9], 4294967040 }
0x15d9   :  { %1344 = vsyncpa [#allocation8], 1 }
0x15da   :  { %1345 = vsyncpa [#allocation9], 1 }
0x15db   :  { %1346 = vsyncmov [#allocation6] }
0x15de   :  { %s1347_s11 = vpop.sfrf %1346 }
0x15df   :  { %p1416_p6 = scmp.ne.s32.totalorder %s1347_s11, 0 }
0x15e1   :  { %1351 = shalt.err (%p1416_p6)  }
0x15e2   :  { %1353 = vsyncmov [#allocation6 + $0x1] }
0x15e5   :  { %s1354_s12 = vpop.sfrf %1353 }
0x15e6   :  { %p1417_p7 = scmp.ne.s32.totalorder %s1354_s12, 0 }
0x15e8   :  { %1358 = shalt.err (%p1417_p7)  }

</bundles_post_ra>
